<compile_context>
chip_gen: v7x
topology: tpu7x:2x2x1
jax: 0.10.0
libtpu: 0.0.40
codegen_flags: <defaults>
</compile_context>

<pallas_src>
import math
import jax
import jax.numpy as jnp
from jax import lax
from jax.experimental import pallas as pl
from jax.experimental.pallas import tpu as pltpu

# ----- hyperparameters (small, consistent with the module __init__) -----
SYMBOL2ID = {'_pad_': 0, '_bos_': 1, '_eos_': 2, '_unk_': 3, '_sep_': 4, '_cls_': 5, '_mask_': 6}
PAD = SYMBOL2ID['_pad_']
VOCAB = 50           # vocab_size
B = 2                # batch
L = 16               # sequence length
E = 32               # emb_size
NF = 8               # num_filters
C = 4                # n_classes
WINDOWS = (3, 4, 5)  # window_sizes
NW = len(WINDOWS)

# ----- derived kernel-layout constants -----
FTOT = NW * NF                       # 24 concatenated conv channels (window-major, filter-minor)
TAPS = max(WINDOWS)                  # 5 taps in the packed tap-major conv weight
PMAX = TAPS - 1                      # 4 = padding of the widest window
CONV_ROWS = L + 2 * PMAX             # 24 fixed, sublane-aligned conv rows per batch row
ROWS = B * CONV_ROWS                 # 48 conv rows for the whole batch
TOK_ROWS = TAPS * ROWS               # 240 shifted-token rows (tap-major)
VP = 56                              # vocab padded up to a multiple of 8 sublanes
LANES = 128                          # lane-dense slab / output width
OUT_ROWS = 8                         # sublane-aligned output rows

# packed f32 weight-slab row offsets (all multiples of 8 -> aligned static slices)
BIAS_ROW = TAPS * VP                 # 280: concatenated conv bias, cols [0:FTOT)
MASK_ROW = 288                       # 288..335: (ROWS, FTOT) valid-row 0/1 mask
FCW_ROW = MASK_ROW + ROWS            # 336..359: (FTOT, LANES) lane-dense-padded FC weight
FCB_ROW = FCW_ROW + FTOT             # 360: (1, LANES) padded FC bias
SLAB_ROWS = 368                      # total rows, padded to a multiple of 8


# ----------------------------- fused forward kernel -----------------------------
def cnn_text_kernel(tok_ref, w_ref, out_ref):
    """Folded one-hot conv (5 tap matmuls) + ReLU + masked max-pool + batched FC, one program."""
    # Shifted one-hot rows for all 5 taps at once: (240, 56).  Sentinel token -1 gives an all-zero
    # row, which reproduces the Conv2d zero padding exactly.
    tok = tok_ref[...]                                               # (TOK_ROWS, 1) int32
    onehot = (tok == lax.broadcasted_iota(jnp.int32, (TOK_ROWS, VP), 1)).astype(jnp.float32)

    # Conv stage for all windows & both batch rows: acc[r] = sum_j onehot[j*ROWS + r] @ T[j]
    acc = jnp.dot(onehot[0:ROWS], w_ref[0:VP, 0:FTOT],
                  preferred_element_type=jnp.float32,
                  precision=lax.Precision.HIGHEST)                   # (48, 24)
    for j in range(1, TAPS):                                         # static unroll, 4 more taps
        acc = acc + jnp.dot(onehot[j * ROWS:(j + 1) * ROWS],
                            w_ref[j * VP:(j + 1) * VP, 0:FTOT],
                            preferred_element_type=jnp.float32,
                            precision=lax.Precision.HIGHEST)

    bias = w_ref[BIAS_ROW:BIAS_ROW + 1, 0:FTOT]                      # (1, 24)
    mask = w_ref[MASK_ROW:MASK_ROW + ROWS, 0:FTOT]                   # (48, 24): 1 = valid conv row
    act = jnp.maximum(acc + bias, 0.0) * mask                        # ReLU, drop rows t >= L+ws-1

    # Per-batch global max-pool, assembled into one sublane-aligned (8, 24) tile.
    pooled = [jnp.max(act[b * CONV_ROWS:(b + 1) * CONV_ROWS], axis=0, keepdims=True)
              for b in range(B)]                                     # static unroll (B = 2)
    pooled = jnp.concatenate(pooled + [jnp.zeros((OUT_ROWS - B, FTOT), jnp.float32)], axis=0)

    # Batched FC -> single lane-dense unmasked (8, 128) store; wrapper slices [:B, :C].
    fcw = w_ref[FCW_ROW:FCW_ROW + FTOT, :]                           # (24, 128)
    fcb = w_ref[FCB_ROW:FCB_ROW + 1, :]                              # (1, 128)
    out_ref[...] = jnp.dot(pooled, fcw, preferred_element_type=jnp.float32,
                           precision=lax.Precision.HIGHEST) + fcb


# ----------------------------- wrapper (layout plumbing in plain JAX) -----------------------------
def _pack_operands(x, params):
    """Build the shifted-token slab and the single packed f32 weight slab."""
    hp = lax.Precision.HIGHEST

    # Shifted token slab: row = j*ROWS + b*CONV_ROWS + t, value = x[b, t + j - PMAX] or -1 sentinel.
    x = jnp.clip(x.astype(jnp.int32), 0, VOCAB - 1)                  # match jnp.take clipping for OOB ids
    pos = jnp.arange(CONV_ROWS)[None, :] + jnp.arange(TAPS)[:, None] - PMAX   # (5, 24)
    valid = (pos >= 0) & (pos < L)
    g = x[:, jnp.clip(pos, 0, L - 1)]                                # (B, 5, 24)
    g = jnp.where(valid[None, :, :], g, -1)                          # padding -> all-zero one-hot row
    tok_shift = jnp.transpose(g, (1, 0, 2)).reshape(TOK_ROWS, 1)

    # Packed weight slab.
    slab = jnp.zeros((SLAB_ROWS, LANES), jnp.float32)
    emb = params['emb']                                              # (VOCAB, E)
    for w_idx, ws in enumerate(WINDOWS):
        cw = params['conv_w'][w_idx][:, 0]                           # (NF, ws, E)
        col0 = w_idx * NF
        for k in range(ws):
            j = k + (TAPS - ws)                                      # right-align taps in the slab
            blk = jnp.dot(emb, cw[:, k, :].T, precision=hp)          # fold embedding: (VOCAB, NF)
            slab = slab.at[j * VP:j * VP + VOCAB, col0:col0 + NF].set(blk)
        slab = slab.at[BIAS_ROW, col0:col0 + NF].set(params['conv_b'][w_idx])

    # Valid-row mask: window ws only produces L + ws - 1 conv rows.
    t = jnp.arange(CONV_ROWS)
    mask_b = jnp.concatenate(
        [jnp.repeat((t < (L + ws - 1)).astype(jnp.float32)[:, None], NF, axis=1) for ws in WINDOWS],
        axis=1)                                                      # (24, 24)
    slab = slab.at[MASK_ROW:MASK_ROW + ROWS, 0:FTOT].set(jnp.concatenate([mask_b] * B, axis=0))

    # fc.weight is (C, NF*NW) with PyTorch's [filter, window] flatten order; reorder rows to
    # [window, filter] blocks and pad lanes to 128 (pure permutation + zero padding).
    fcw_k = (jnp.transpose(params['fc_w'])                           # (NF*NW, C)
             .reshape(NF, NW, C).transpose(1, 0, 2).reshape(FTOT, C))
    slab = slab.at[FCW_ROW:FCW_ROW + FTOT, 0:C].set(fcw_k)
    slab = slab.at[FCB_ROW, 0:C].set(params['fc_b'])
    return tok_shift, slab


def cnn_text_forward(x, params):
    """Mirror of CnnTextClassifier.forward([x]) -> [logits], as one fused pallas_call."""
    tok_shift, slab = _pack_operands(x, params)
    out = pl.pallas_call(
        cnn_text_kernel,
        out_shape=jax.ShapeDtypeStruct((OUT_ROWS, LANES), jnp.float32),   # lane-dense padded output
        in_specs=[pl.BlockSpec(memory_space=pltpu.MemorySpace.VMEM),
                  pl.BlockSpec(memory_space=pltpu.MemorySpace.VMEM)],
        out_specs=pl.BlockSpec(memory_space=pltpu.MemorySpace.VMEM),
    )(tok_shift, slab)
    return [out[:B, :C]]                                              # outputs = [logits]


# ----------------------------- parameters / reference -----------------------------
def init_params(key):
    ks = jax.random.split(key, 3 + 2 * NW)
    emb = jax.random.normal(ks[0], (VOCAB, E), jnp.float32)          # nn.Embedding default: N(0,1)
    conv_w, conv_b = [], []
    for i, ws in enumerate(WINDOWS):
        bound = 1.0 / math.sqrt(1 * ws * E)                          # Conv2d default init bound
        conv_w.append(jax.random.uniform(ks[1 + 2 * i], (NF, 1, ws, E), jnp.float32, -bound, bound))
        conv_b.append(jax.random.uniform(ks[2 + 2 * i], (NF,), jnp.float32, -bound, bound))
    fb = 1.0 / math.sqrt(NF * NW)                                    # Linear default init bound
    fc_w = jax.random.uniform(ks[1 + 2 * NW], (C, NF * NW), jnp.float32, -fb, fb)
    fc_b = jax.random.uniform(ks[2 + 2 * NW], (C,), jnp.float32, -fb, fb)
    return dict(emb=emb, conv_w=conv_w, conv_b=conv_b, fc_w=fc_w, fc_b=fc_b)


def reference_forward(x, params):
    """Pure-JAX reference of the PyTorch forward (highest precision, for a tight correctness check)."""
    hp = lax.Precision.HIGHEST
    emb = jnp.take(params['emb'], x, axis=0)                         # (B, L, E)
    feats = []
    for i, ws in enumerate(WINDOWS):
        cw = params['conv_w'][i][:, 0]                               # (NF, ws, E)
        cb = params['conv_b'][i]                                     # (NF,)
        p = ws - 1
        ep = jnp.pad(emb, ((0, 0), (p, p), (0, 0)))
        rows = []
        for t in range(L + p):
            win = ep[:, t:t + ws, :]                                 # (B, ws, E)
            rows.append(jnp.einsum('bke,fke->bf', win, cw, precision=hp) + cb)
        conv = jnp.stack(rows, axis=1)                               # (B, L+p, NF)
        feats.append(jnp.max(jax.nn.relu(conv), axis=1))             # (B, NF)
    pooled = jnp.stack(feats, axis=2)                                # (B, NF, NW)
    flat = pooled.reshape(B, NF * NW)                                # PyTorch .view order
    return jnp.dot(flat, params['fc_w'].T, precision=hp) + params['fc_b']


if __name__ == "__main__":
    key = jax.random.PRNGKey(0)
    k_par, k_x = jax.random.split(key)
    params = init_params(k_par)
    # token ids in [7, VOCAB) so they never collide with the special symbols / PAD
    x = jax.random.randint(k_x, (B, L), 7, VOCAB, dtype=jnp.int32)
    x = x.at[1, 12:].set(PAD)                                        # pad the tail of sequence 1

    outputs = cnn_text_forward(x, params)
    logits = jax.block_until_ready(outputs[0])
    ref = reference_forward(x, params)

    assert logits.shape == (B, C)
    assert bool(jnp.all(jnp.isfinite(logits)))
    assert bool(jnp.allclose(logits, ref, atol=1e-4, rtol=1e-4))
    print("KERNEL_OK")
</pallas_src>

<mosaic_0001>
module attributes {stable_mosaic.version = 11 : i64} {
  func.func @cnn_text_kernel(%arg0: memref<240x1xi32, #tpu.memory_space<vmem>>, %arg1: memref<368x128xf32, #tpu.memory_space<vmem>>, %arg2: memref<8x128xf32, #tpu.memory_space<vmem>>) attributes {dimension_semantics = [], scalar_prefetch = 0 : i64, scratch_operands = 0 : i64, tpu.core_type = #tpu.core_type<tc>} {
    %c0 = arith.constant 0 : index
    %c0_0 = arith.constant 0 : index
    %0 = vector.load %arg0[%c0, %c0_0] : memref<240x1xi32, #tpu.memory_space<vmem>>, vector<240x1xi32>
    %1 = tpu.iota {dimensions = array<i32: 1>} : vector<240x56xi32>
    %2 = vector.broadcast %0 : vector<240x1xi32> to vector<240x56xi32>
    %3 = arith.cmpi eq, %2, %1 : vector<240x56xi32>
    %4 = arith.extui %3 : vector<240x56xi1> to vector<240x56xi32>
    %5 = arith.sitofp %4 : vector<240x56xi32> to vector<240x56xf32>
    %6 = vector.extract_strided_slice %5 {offsets = [0, 0], sizes = [48, 56], strides = [1, 1]} : vector<240x56xf32> to vector<48x56xf32>
    %c0_1 = arith.constant 0 : index
    %c0_2 = arith.constant 0 : index
    %7 = vector.load %arg1[%c0_1, %c0_2] : memref<368x128xf32, #tpu.memory_space<vmem>>, vector<56x24xf32>
    %cst = arith.constant dense<0.000000e+00> : vector<48x24xf32>
    %8 = tpu.matmul %6, %7, %cst {dimension_numbers = #tpu.dot_dimension_numbers<[1], [0], [0], [1], [0, 0, 1, 1], [], []>, precision = #tpu.contract_precision<fp32>} : vector<48x56xf32>, vector<56x24xf32>, vector<48x24xf32> -> vector<48x24xf32>
    %9 = vector.extract_strided_slice %5 {offsets = [48, 0], sizes = [48, 56], strides = [1, 1]} : vector<240x56xf32> to vector<48x56xf32>
    %c56 = arith.constant 56 : index
    %c0_3 = arith.constant 0 : index
    %10 = vector.load %arg1[%c56, %c0_3] : memref<368x128xf32, #tpu.memory_space<vmem>>, vector<56x24xf32>
    %cst_4 = arith.constant dense<0.000000e+00> : vector<48x24xf32>
    %11 = tpu.matmul %9, %10, %cst_4 {dimension_numbers = #tpu.dot_dimension_numbers<[1], [0], [0], [1], [0, 0, 1, 1], [], []>, precision = #tpu.contract_precision<fp32>} : vector<48x56xf32>, vector<56x24xf32>, vector<48x24xf32> -> vector<48x24xf32>
    %12 = arith.addf %8, %11 : vector<48x24xf32>
    %13 = vector.extract_strided_slice %5 {offsets = [96, 0], sizes = [48, 56], strides = [1, 1]} : vector<240x56xf32> to vector<48x56xf32>
    %c112 = arith.constant 112 : index
    %c0_5 = arith.constant 0 : index
    %14 = vector.load %arg1[%c112, %c0_5] : memref<368x128xf32, #tpu.memory_space<vmem>>, vector<56x24xf32>
    %cst_6 = arith.constant dense<0.000000e+00> : vector<48x24xf32>
    %15 = tpu.matmul %13, %14, %cst_6 {dimension_numbers = #tpu.dot_dimension_numbers<[1], [0], [0], [1], [0, 0, 1, 1], [], []>, precision = #tpu.contract_precision<fp32>} : vector<48x56xf32>, vector<56x24xf32>, vector<48x24xf32> -> vector<48x24xf32>
    %16 = arith.addf %12, %15 : vector<48x24xf32>
    %17 = vector.extract_strided_slice %5 {offsets = [144, 0], sizes = [48, 56], strides = [1, 1]} : vector<240x56xf32> to vector<48x56xf32>
    %c168 = arith.constant 168 : index
    %c0_7 = arith.constant 0 : index
    %18 = vector.load %arg1[%c168, %c0_7] : memref<368x128xf32, #tpu.memory_space<vmem>>, vector<56x24xf32>
    %cst_8 = arith.constant dense<0.000000e+00> : vector<48x24xf32>
    %19 = tpu.matmul %17, %18, %cst_8 {dimension_numbers = #tpu.dot_dimension_numbers<[1], [0], [0], [1], [0, 0, 1, 1], [], []>, precision = #tpu.contract_precision<fp32>} : vector<48x56xf32>, vector<56x24xf32>, vector<48x24xf32> -> vector<48x24xf32>
    %20 = arith.addf %16, %19 : vector<48x24xf32>
    %21 = vector.extract_strided_slice %5 {offsets = [192, 0], sizes = [48, 56], strides = [1, 1]} : vector<240x56xf32> to vector<48x56xf32>
    %c224 = arith.constant 224 : index
    %c0_9 = arith.constant 0 : index
    %22 = vector.load %arg1[%c224, %c0_9] : memref<368x128xf32, #tpu.memory_space<vmem>>, vector<56x24xf32>
    %cst_10 = arith.constant dense<0.000000e+00> : vector<48x24xf32>
    %23 = tpu.matmul %21, %22, %cst_10 {dimension_numbers = #tpu.dot_dimension_numbers<[1], [0], [0], [1], [0, 0, 1, 1], [], []>, precision = #tpu.contract_precision<fp32>} : vector<48x56xf32>, vector<56x24xf32>, vector<48x24xf32> -> vector<48x24xf32>
    %24 = arith.addf %20, %23 : vector<48x24xf32>
    %c280 = arith.constant 280 : index
    %c0_11 = arith.constant 0 : index
    %25 = vector.load %arg1[%c280, %c0_11] : memref<368x128xf32, #tpu.memory_space<vmem>>, vector<1x24xf32>
    %c288 = arith.constant 288 : index
    %c0_12 = arith.constant 0 : index
    %26 = vector.load %arg1[%c288, %c0_12] : memref<368x128xf32, #tpu.memory_space<vmem>>, vector<48x24xf32>
    %27 = vector.broadcast %25 : vector<1x24xf32> to vector<48x24xf32>
    %28 = arith.addf %24, %27 : vector<48x24xf32>
    %cst_13 = arith.constant 0.000000e+00 : f32
    %29 = vector.broadcast %cst_13 : f32 to vector<48x24xf32>
    %30 = arith.maximumf %28, %29 : vector<48x24xf32>
    %31 = arith.mulf %30, %26 : vector<48x24xf32>
    %32 = vector.extract_strided_slice %31 {offsets = [0, 0], sizes = [24, 24], strides = [1, 1]} : vector<48x24xf32> to vector<24x24xf32>
    %cst_14 = arith.constant dense<0xFF800000> : vector<24xf32>
    %33 = vector.multi_reduction <maximumf>, %32, %cst_14 [0] : vector<24x24xf32> to vector<24xf32>
    %34 = vector.shape_cast %33 : vector<24xf32> to vector<1x24xf32>
    %35 = vector.extract_strided_slice %31 {offsets = [24, 0], sizes = [24, 24], strides = [1, 1]} : vector<48x24xf32> to vector<24x24xf32>
    %cst_15 = arith.constant dense<0xFF800000> : vector<24xf32>
    %36 = vector.multi_reduction <maximumf>, %35, %cst_15 [0] : vector<24x24xf32> to vector<24xf32>
    %37 = vector.shape_cast %36 : vector<24xf32> to vector<1x24xf32>
    %cst_16 = arith.constant 0.000000e+00 : f32
    %38 = vector.broadcast %cst_16 : f32 to vector<6x24xf32>
    %39 = tpu.concatenate %34, %37, %38 in 0 : vector<1x24xf32>, vector<1x24xf32>, vector<6x24xf32> -> vector<8x24xf32>
    %c336 = arith.constant 336 : index
    %c0_17 = arith.constant 0 : index
    %40 = vector.load %arg1[%c336, %c0_17] : memref<368x128xf32, #tpu.memory_space<vmem>>, vector<24x128xf32>
    %c360 = arith.constant 360 : index
    %c0_18 = arith.constant 0 : index
    %41 = vector.load %arg1[%c360, %c0_18] : memref<368x128xf32, #tpu.memory_space<vmem>>, vector<1x128xf32>
    %cst_19 = arith.constant dense<0.000000e+00> : vector<8x128xf32>
    %42 = tpu.matmul %39, %40, %cst_19 {dimension_numbers = #tpu.dot_dimension_numbers<[1], [0], [0], [1], [0, 0, 1, 1], [], []>, precision = #tpu.contract_precision<fp32>} : vector<8x24xf32>, vector<24x128xf32>, vector<8x128xf32> -> vector<8x128xf32>
    %43 = vector.broadcast %41 : vector<1x128xf32> to vector<8x128xf32>
    %44 = arith.addf %42, %43 : vector<8x128xf32>
    %c0_20 = arith.constant 0 : index
    %c0_21 = arith.constant 0 : index
    %45 = vector.load %arg2[%c0_20, %c0_21] : memref<8x128xf32, #tpu.memory_space<vmem>>, vector<8x128xf32>
    tpu.vector_store %arg2[%c0_20, %c0_21], %44 {strides = array<i32>} : memref<8x128xf32, #tpu.memory_space<vmem>>, vector<8x128xf32>,
    return
  }
}

</mosaic_0001>

<bundles_post_ra>
// kernel: tpu_custom_call.1
= control target key start
LH: loop header
LB: loop body
LE: loop exit
PB: predicated region body
PF: predicated region fallthrough
CT: control target
= control target key end

     0   :  { %7 = vsyncpa [#allocation3], 0  ;;  %s7931_s0 = inlined_call_operand.vmem [shape: s32[240,1], index: 0, kind: input, shape index: {}]   ;;  %s7932_s1 = inlined_call_operand.hbm [shape: f32[368,128], index: 1, kind: input, shape index: {}]   ;;  %s7933_s2 = inlined_call_operand.hbm [shape: f32[8,128], index: 2, kind: output, shape index: {}]  }
   0x1   :  { %8 = vsyncpa [#allocation4], 0  ;;  %s6532_s9 = smov [#allocation2]   ;;  %s6484_s13 = scalar_lea.hbm %s7932_s1, 5888 }
   0x2   :  { %s16_s10 = sshll.u32 %s6532_s9, 4  ;;  %p6485_p0 = scmp.ne.s32.totalorder %s7932_s1, %s6484_s13  ;;  %s17_s10 = int_to_ptr.vmem [resolvable:$true] %s16_s10 }
   0x3   :  { %p6488_p1 = scmp.lt.u32.totalorder %s6484_s13, %s7932_s1 }
   0x5   :  { %p6490_p2 = pnand %p6488_p1, %p6485_p0 }
   0x7   :  { %6493 = shalt.err (!%p6490_p2)
}
   0x8   :  { %s6494_s18 = scalar_lea.vmem %s17_s10, 5888  ;;  %p6499_p4 = scmp.lt.s32.totalorder %s17_s10, %s17_s10 }
   0x9   :  { %p6495_p3 = scmp.ne.s32.totalorder %s17_s10, %s6494_s18  ;;  %p6500_p5 = scmp.lt.s32.totalorder %s6494_s18, %s6494_s18 }
   0xb   :  { %p6501_p6 = por %p6500_p5, %p6499_p4 }
   0xd   :  { %p6502_p7 = pnand %p6501_p6, %p6495_p3 }
   0xf   :  { %6505 = shalt.err (!%p6502_p7)
}
  0x10   :  { %s6533_s19 = smov 128   ;;  %s6534_s20 = smov 8  }
  0x11   :  { %22 = dma.hbm_to_vmem [thread:$0]  %s7932_s1, 5888, %s17_s10, [#allocation3], %s6533_s19, %s6533_s19, %s6534_s20  }
  0x12   :  { %6528 = dma.done.wait [#allocation3], 5888  }
  0x13   :  { %6529 = vsyncadd [#allocation3], 4294961408  ;;  %v6535_v0 = vmov 0   ;;  %v40_v1 = vld [vmem:[%s7931_s0 + $0x70] sm:$0xff]  ;;  %v38_v2 = vld [vmem:[%s7931_s0 + $0x60] sm:$0xff]  ;;  %vm252_vm0 = vcmask 457728  }
  0x14   :  { %6483 = vset.pattern.permute.xlu1 %v6535_v0  ;;  %6482 = vset.pattern.permute.xlu0 %v6535_v0  ;;  %v41_v3 = vld [vmem:[%s7931_s0 + $0x78] sm:$0xff]  ;;  %v39_v4 = vld [vmem:[%s7931_s0 + $0x68] sm:$0xff]  ;;  %v42_v6 = vld [vmem:[%s7931_s0 + $0x80] sm:$0xff] }
  0x15   :  { %101 = vperm.xlu1 %6483, %v40_v1   ;;  %95 = vperm.xlu0 %6482, %v38_v2   ;;  %v43_v5 = vld [vmem:[%s7931_s0 + $0x88] sm:$0xff]  ;;  %v33_v7 = vld [vmem:[%s7931_s0 + $0x38] sm:$0xff]  ;;  %v32_v8 = vld [vmem:[%s7931_s0 + $0x30] sm:$0xff] }
  0x16   :  { %v6591_v9 = vld [vmem:[#allocation2 + $0x70] sm:$0xff]  ;;  %v6593_v10 = vld [vmem:[#allocation2 + $0x78] sm:$0xff]  ;;  %v1769_v11 = vld [vmem:[#allocation2 + $0x80] sm:$0xff] }
  0x17   :  { %v1793_v12 = vand.u32 4294901760, %v6591_v9  ;;  %v1796_v13 = vand.u32 4294901760, %v6593_v10  ;;  %v1770_v14 = vld [vmem:[#allocation2 + $0x88] sm:$0xff]  ;;  %v1799_v15 = vand.u32 4294901760, %v1769_v11  ;;  %v1771_v16 = vld [vmem:[#allocation2 + $0x90] sm:$0xff]  ;;  %v1772_v17 = vld [vmem:[#allocation2 + $0x98] sm:$0xff] }
  0x18   :  { %v1802_v18 = vand.u32 4294901760, %v1770_v14  ;;  %v1805_v19 = vand.u32 4294901760, %v1771_v16  ;;  %v1808_v20 = vand.u32 4294901760, %v1772_v17  ;;  %v245_v23 = vld [vmem:[#allocation2 + $0x38] sm:$0xff]  ;;  %v246_v24 = vld [vmem:[#allocation2 + $0x40] sm:$0xff]  ;;  %v247_v25 = vld [vmem:[#allocation2 + $0x48] sm:$0xff] }
  0x19   :  { %104 = vperm.xlu1 %6483, %v41_v3   ;;  %98 = vperm.xlu0 %6482, %v39_v4   ;;  %v6600_v21 = vsub.f32 %v6591_v9, %v1793_v12  ;;  %v6605_v22 = vsub.f32 %v6593_v10, %v1796_v13  ;;  %v35_v26 = vld [vmem:[%s7931_s0 + $0x48] sm:$0xff]  ;;  %v34_v27 = vld [vmem:[%s7931_s0 + $0x40] sm:$0xff]  ;;  %v6615_v29 = vsub.f32 %v1769_v11, %v1799_v15  ;;  %v248_v32 = vld [vmem:[#allocation2 + $0x50] sm:$0xff]  ;;  %v272_v37 = vand.u32 4294901760, %v245_v23 }
  0x1a   :  { %v6613_v28 = vpack.c.bf16 %v1802_v18, %v1799_v15  ;;  %v6617_v30 = vsub.f32 %v1770_v14, %v1802_v18  ;;  %v6619_v31 = vpack.c.bf16 %v1808_v20, %v1805_v19  ;;  %v6623_v34 = vsub.f32 %v1771_v16, %v1805_v19  ;;  %v249_v40 = vld [vmem:[#allocation2 + $0x58] sm:$0xff]  ;;  %v250_v41 = vld [vmem:[#allocation2 + $0x60] sm:$0xff]  ;;  %v36_v45 = vld [vmem:[%s7931_s0 + $0x50] sm:$0xff] }
  0x1b   :  { %7997 = vst [vmem:[#allocation8_spill] sm:$0xff] %v6600_v21  ;;  %7998 = vst [vmem:[#allocation9_spill] sm:$0xff] %v6605_v22  ;;  %v6080_v33 = vpack.c.bf16 %v6605_v22, %v6600_v21  ;;  %v6625_v35 = vsub.f32 %v1772_v17, %v1808_v20  ;;  %v275_v38 = vand.u32 4294901760, %v246_v24  ;;  %v278_v39 = vand.u32 4294901760, %v247_v25  ;;  %v1773_v42 = vld [vmem:[#allocation2 + $0xa0] sm:$0xff]  ;;  %v37_v44 = vld [vmem:[%s7931_s0 + $0x58] sm:$0xff] }
  0x1c   :  { %7999 = vst [vmem:[#allocation10_spill] sm:$0xff] %v6613_v28  ;;  %8000 = vst [vmem:[#allocation11_spill] sm:$0xff] %v6615_v29  ;;  %v6084_v36 = vpack.c.bf16 %v6617_v30, %v6615_v29  ;;  %v281_v43 = vand.u32 4294901760, %v248_v32  ;;  %v6637_v47 = vsub.f32 %v245_v23, %v272_v37  ;;  %v284_v50 = vand.u32 4294901760, %v249_v40  ;;  %v45_v58 = vld [vmem:[%s7931_s0 + $0x98] sm:$0xff]  ;;  %v44_v59 = vld [vmem:[%s7931_s0 + $0x90] sm:$0xff] }
  0x1d   :  { %110 = vperm.xlu1 %6483, %v43_v5   ;;  %107 = vperm.xlu0 %6482, %v42_v6   ;;  %8001 = vst [vmem:[#allocation12_spill] sm:$0xff] %v6617_v30  ;;  %8002 = vst [vmem:[#allocation13_spill] sm:$0xff] %v6619_v31  ;;  %v6635_v46 = vpack.c.bf16 %v275_v38, %v272_v37  ;;  %v6639_v48 = vsub.f32 %v246_v24, %v275_v38  ;;  %v287_v51 = vand.u32 4294901760, %v250_v41  ;;  %v6667_v62 = vld [vmem:[#allocation2 + $0x68] sm:$0xff]  ;;  %v48_v9 = vld [vmem:[%s7931_s0 + $0xb0] sm:$0xff] }
  0x1e   :  { %8003 = vst [vmem:[#allocation14_spill] sm:$0xff] %v6623_v34  ;;  %8004 = vst [vmem:[#allocation15_spill] sm:$0xff] %v6625_v35  ;;  %6081 = vmatprep.subr.bf16.mxu0 %v6080_v33  ;;  %v6641_v49 = vpack.c.bf16 %v281_v43, %v278_v39  ;;  %v6088_v52 = vpack.c.bf16 %v6625_v35, %v6623_v34  ;;  %v6645_v53 = vand.u32 4294901760, %v1773_v42  ;;  %v406_v54 = vand.u32 4294901760, %v6637_v47  ;;  %v47_v6 = vld [vmem:[%s7931_s0 + $0xa8] sm:$0xff]  ;;  %v28_v37 = vld [vmem:[%s7931_s0 + $0x10] sm:$0xff] }
  0x1f   :  { %6083 = vmatpush3.bf16.msra.mxu0 %v6080_v33  ;;  %5913 = vmatprep.subr.bf16.mxu1 %v6635_v46  ;;  %v413_v55 = vand.u32 4294901760, %v6639_v48  ;;  %v6650_v56 = vsub.f32 %v247_v25, %v278_v39  ;;  %v6652_v57 = vsub.f32 %v248_v32, %v281_v43  ;;  %v6665_v61 = vpack.c.bf16 %v287_v51, %v284_v50  ;;  %v49_v25 = vld [vmem:[%s7931_s0 + $0xb8] sm:$0xff]  ;;  %v26_v32 = vld [vmem:[%s7931_s0] sm:$0xff]  ;;  %v31_v39 = vld [vmem:[%s7931_s0 + $0x28] sm:$0xff] }
  0x20   :  { %6085 = vmatprep.subr.bf16.mxu0 %v6084_v36  ;;  %8005 = vst [vmem:[#allocation16_spill] sm:$0xff] %v6645_v53  ;;  %5915 = vmatpush3.bf16.msra.mxu1 %v6635_v46  ;;  %v407_v60 = vsub.f32 %v6637_v47, %v406_v54  ;;  %v6675_v2 = vsub.f32 %v1773_v42, %v6645_v53  ;;  %v51_v42 = vld [vmem:[%s7931_s0 + $0xc8] sm:$0xff]  ;;  %v50_v43 = vld [vmem:[%s7931_s0 + $0xc0] sm:$0xff] }
  0x21   :  { %80 = vperm.xlu1 %6483, %v33_v7   ;;  %77 = vperm.xlu0 %6482, %v32_v8   ;;  %v414_v63 = vsub.f32 %v6639_v48, %v413_v55  ;;  %v420_v0 = vand.u32 4294901760, %v6650_v56  ;;  %v427_v1 = vand.u32 4294901760, %v6652_v57  ;;  %v6683_v5 = vsub.f32 %v249_v40, %v284_v50  ;;  %v46_v7 = vld [vmem:[%s7931_s0 + $0xa0] sm:$0xff]  ;;  %v52_v50 = vld [vmem:[%s7931_s0 + $0xd0] sm:$0xff] }
  0x22   :  { %5917 = vmatprep.subr.bf16.mxu1 %v6641_v49  ;;  %8006 = vst [vmem:[#allocation17_spill] sm:$0xff] %v6675_v2  ;;  %v6693_v8 = vand.u32 4294901760, %v6667_v62  ;;  %v408_v11 = vand.u32 4294901760, %v407_v60  ;;  %v440_v14 = vsub.f32 %v250_v41, %v287_v51  ;;  %v6701_v19 = vpack.c.bf16 %v1796_v13, %v1793_v12  ;;  %v30_v40 = vld [vmem:[%s7931_s0 + $0x20] sm:$0xff]  ;;  %v55_v51 = vld [vmem:[%s7931_s0 + $0xe8] sm:$0xff] }
  0x23   :  { %6087 = vmatpush3.bf16.msra.mxu0 %v6084_v36  ;;  %v421_v3 = vsub.f32 %v6650_v56, %v420_v0  ;;  %v428_v4 = vsub.f32 %v6652_v57, %v427_v1  ;;  %v415_v15 = vand.u32 4294901760, %v414_v63  ;;  %v434_v18 = vand.u32 4294901760, %v6683_v5  ;;  %v29_v36 = vld [vmem:[%s7931_s0 + $0x18] sm:$0xff] }
  0x24   :  { %6089 = vmatprep.subr.bf16.mxu0 %v6088_v52  ;;  %5919 = vmatpush3.bf16.msra.mxu1 %v6641_v49  ;;  %v441_v20 = vand.u32 4294901760, %v440_v14  ;;  %v6737_v38 = vpack.c.bf16 %v6639_v48, %v6637_v47  ;;  %v6747_v41 = vpack.c.bf16 %v6652_v57, %v6650_v56  ;;  %v56_v63 = vlaneseq }
  0x25   :  { %86 = vperm.xlu1 %6483, %v35_v26   ;;  %83 = vperm.xlu0 %6482, %v34_v27   ;;  %v422_v16 = vand.u32 4294901760, %v421_v3  ;;  %v429_v17 = vand.u32 4294901760, %v428_v4  ;;  %v435_v24 = vsub.f32 %v6683_v5, %v434_v18  ;;  %v6716_v12 = vpack.c.bf16 %v415_v15, %v408_v11  ;;  %v27_v27 = vld [vmem:[%s7931_s0 + $0x8] sm:$0xff] }
  0x26   :  { %5921 = vmatprep.subr.bf16.mxu1 %v6665_v61  ;;  %v442_v10 = vsub.f32 %v440_v14, %v441_v20  ;;  %v6782_v60 = vpack.c.bf16 %v441_v20, %v434_v18  ;;  %v6784_v3 = vand.u32 127, %v56_v63  ;;  %v7945_v47 = vmov 0.0  }
  0x27   :  { %6091 = vmatpush3.bf16.msra.mxu0 %v6088_v52  ;;  %v6704_v23 = vpack.c.bf16 %v429_v17, %v422_v16  ;;  %v436_v13 = vand.u32 4294901760, %v435_v24  ;;  %v54_v52 = vld [vmem:[%s7931_s0 + $0xe0] sm:$0xff] }
  0x28   :  { %5502 = vmatprep.subr.mxu0 %v6675_v2  ;;  %5923 = vmatpush3.bf16.msra.mxu1 %v6665_v61  ;;  %v443_v26 = vand.u32 4294901760, %v442_v10 }
  0x29   :  { %92 = vperm.xlu1 %6483, %v37_v44   ;;  %89 = vperm.xlu0 %6482, %v36_v45   ;;  %v6756_v44 = vpack.c.bf16 %v440_v14, %v6683_v5  ;;  %v53_v45 = vld [vmem:[%s7931_s0 + $0xd8] sm:$0xff]  ;;  %s6539_s0 = smov [#allocation5]  }
  0x2a   :  { %5180 = vmatprep.subr.mxu1 %v6693_v8  ;;  %v6726_v33 = vpack.c.bf16 %v443_v26, %v436_v13  ;;  %s4623_s25 = sshll.u32 %s6539_s0, 4  ;;  %s4624_s25 = int_to_ptr.vmem [resolvable:$true] %s4623_s25 }
  0x2b   :  { %5503 = vmatpush3.msra.mxu0 %v6675_v2  ;;  %s6506_s26 = scalar_lea.vmem %s4624_s25, 128  ;;  %p6511_p9 = scmp.lt.s32.totalorder %s4624_s25, %s4624_s25 }
  0x2c   :  { %6093 = vmatprep.subr.bf16.mxu0 %v6701_v19  ;;  %5181 = vmatpush3.msra.mxu1 %v6693_v8  ;;  %p6507_p8 = scmp.ne.s32.totalorder %s4624_s25, %s6506_s26  ;;  %p6512_p10 = scmp.lt.s32.totalorder %s6506_s26, %s6506_s26 }
  0x2d   :  { %116 = vperm.xlu1 %6483, %v45_v58   ;;  %113 = vperm.xlu0 %6482, %v44_v59   ;;  %v6774_v58 = vpack.c.bf16 %v413_v55, %v406_v54  ;;  %v6780_v59 = vpack.c.bf16 %v427_v1, %v420_v0 }
  0x2e   :  { %5925 = vmatprep.subr.bf16.mxu1 %v6716_v12  ;;  %p6513_p11 = por %p6512_p10, %p6511_p9 }
  0x30   :  { %p6514_p12 = pnand %p6513_p11, %p6507_p8 }
  0x31   :  { %122 = vperm.xlu1 %6483, %v47_v6   ;;  %119 = vperm.xlu0 %6482, %v46_v7  }
  0x35   :  { %128 = vperm.xlu1 %6483, %v49_v25   ;;  %125 = vperm.xlu0 %6482, %v48_v9  }
  0x39   :  { %62 = vperm.xlu1 %6483, %v27_v27   ;;  %59 = vperm.xlu0 %6482, %v26_v32  }
  0x3d   :  { %68 = vperm.xlu1 %6483, %v29_v36   ;;  %65 = vperm.xlu0 %6482, %v28_v37  }
  0x41   :  { %74 = vperm.xlu1 %6483, %v31_v39   ;;  %71 = vperm.xlu0 %6482, %v30_v40   ;;  %v7937_v39 = vand.u32 4294901760, %v6600_v21  ;;  %v7936_v40 = vand.u32 4294901760, %v6605_v22 }
  0x45   :  { %134 = vperm.xlu1 %6483, %v51_v42   ;;  %131 = vperm.xlu0 %6482, %v50_v43  }
  0x49   :  { %140 = vperm.xlu1 %6483, %v53_v45   ;;  %137 = vperm.xlu0 %6482, %v52_v50  }
  0x4d   :  { %146 = vperm.xlu1 %6483, %v55_v51   ;;  %143 = vperm.xlu0 %6482, %v54_v52   ;;  %v7935_v51 = vand.u32 4294901760, %v6615_v29  ;;  %v7934_v52 = vand.u32 4294901760, %v6617_v30 }
  0x94   :  { %v102_v4 = vpop.permute.xlu1 %101  ;;  %v96_v5 = vpop.permute.xlu0 %95 }
  0x95   :  { %vm162_vm1 = vcmp.eq.s32.totalorder %v102_v4, %v6784_v3  ;;  %vm160_vm2 = vcmp.eq.s32.totalorder %v96_v5, %v6784_v3 }
  0x96   :  { %v6789_v48 = vsel %vm162_vm1, 1.0, %v7945_v47  ;;  %v6792_v54 = vsel %vm160_vm2, 1.0, %v7945_v47 }
  0x97   :  { %8007 = vst [vmem:[#allocation18_spill] sm:$0xff] %v6789_v48  ;;  %8008 = vst [vmem:[#allocation19_spill] sm:$0xff] %v6792_v54  ;;  %v1775_v55 = vsel %vm252_vm0, %v6792_v54, 0  ;;  %v1781_v56 = vsel %vm252_vm0, %v6789_v48, 0 }
  0x98   :  { %v105_v57 = vpop.permute.xlu1 %104  ;;  %v99_v0 = vpop.permute.xlu0 %98  ;;  %v6798_v1 = vsub.f32 %v1775_v55, %v1775_v55  ;;  %v6800_v6 = vsub.f32 %v1781_v56, %v1781_v56 }
  0x99   :  { %vm163_vm3 = vcmp.eq.s32.totalorder %v105_v57, %v6784_v3  ;;  %vm161_vm4 = vcmp.eq.s32.totalorder %v99_v0, %v6784_v3 }
  0x9a   :  { %v6805_v7 = vsel %vm163_vm3, 1.0, %v7945_v47  ;;  %v6808_v11 = vsel %vm161_vm4, 1.0, %v7945_v47  ;;  %5504 = vmatprep.mubr.f32.mxu0 %v6798_v1  ;;  %v1866_v14 = vand.u32 4294901760, %v6798_v1  ;;  %v7940_v15 = vand.u32 4294901760, %v6800_v6 }
  0x9b   :  { %8009 = vst [vmem:[#allocation20_spill] sm:$0xff] %v6805_v7  ;;  %8010 = vst [vmem:[#allocation21_spill] sm:$0xff] %v6808_v11  ;;  %v1778_v16 = vsel %vm252_vm0, %v6808_v11, 0  ;;  %v1784_v17 = vsel %vm252_vm0, %v6805_v7, 0 }
  0x9c   :  { %v111_v18 = vpop.permute.xlu1 %110  ;;  %v108_v20 = vpop.permute.xlu0 %107  ;;  %v6817_v24 = vsub.f32 %v1778_v16, %v1778_v16  ;;  %v6819_v25 = vsub.f32 %v1784_v17, %v1784_v17  ;;  %v6822_v9 = vsub.f32 %v6798_v1, %v1866_v14  ;;  %v6827_v10 = vsub.f32 %v6800_v6, %v7940_v15 }
  0x9d   :  { %vm165_vm5 = vcmp.eq.s32.totalorder %v111_v18, %v6784_v3  ;;  %vm164_vm6 = vcmp.eq.s32.totalorder %v108_v20, %v6784_v3  ;;  %v6104_v18 = vpack.c.bf16 %v7936_v40, %v7937_v39 }
  0x9e   :  { %8011 = vst [vmem:[#allocation22_spill] sm:$0xff] %v6822_v9  ;;  %8012 = vst [vmem:[#allocation23_spill] sm:$0xff] %v6827_v10  ;;  %v6832_v13 = vsel %vm165_vm5, 1.0, %v7945_v47  ;;  %v6835_v26 = vsel %vm164_vm6, 1.0, %v7945_v47  ;;  %v7941_v27 = vand.u32 4294901760, %v6817_v24  ;;  %5505 = vmatmul.mubr.f32.vlgmr.msra.gmra.mrb[0].mxu0 %v6817_v24  ;;  %v7939_v32 = vand.u32 4294901760, %v6819_v25 }
  0x9f   :  { %8013 = vst [vmem:[#allocation24_spill] sm:$0xff] %v6832_v13  ;;  %8014 = vst [vmem:[#allocation25_spill] sm:$0xff] %v6835_v26  ;;  %6095 = vmatpush3.bf16.msra.mxu0 %v6701_v19  ;;  %5507 = vmatprep.mubr.f32.mxu0 %v6800_v6  ;;  %v1787_v36 = vsel %vm252_vm0, %v6835_v26, 0  ;;  %v1790_v37 = vsel %vm252_vm0, %v6832_v13, 0 }
  0xa0   :  { %v6851_v42 = vsub.f32 %v6817_v24, %v7941_v27  ;;  %v81_v43 = vpop.permute.xlu1 %80  ;;  %v78_v45 = vpop.permute.xlu0 %77  ;;  %6097 = vmatprep.subr.bf16.mxu0 %v6613_v28  ;;  %v6854_v50 = vsub.f32 %v1787_v36, %v1787_v36  ;;  %v6860_v63 = vsub.f32 %v1790_v37, %v1790_v37  ;;  %v6865_v4 = vsub.f32 %v6819_v25, %v7939_v32 }
  0xa1   :  { %vm155_vm7 = vcmp.eq.s32.totalorder %v81_v43, %v6784_v3  ;;  %vm154_vm8 = vcmp.eq.s32.totalorder %v78_v45, %v6784_v3  ;;  %v6108_v37 = vpack.c.bf16 %v7934_v52, %v7935_v51 }
  0xa2   :  { %8015 = vst [vmem:[#allocation26_spill] sm:$0xff] %v6851_v42  ;;  %8016 = vst [vmem:[#allocation27_spill] sm:$0xff] %v6865_v4  ;;  %v6868_v5 = vsel %vm155_vm7, 1.0, %v7945_v47  ;;  %v6871_v55 = vsel %vm154_vm8, 1.0, %v7945_v47  ;;  %5508 = vmatmul.mubr.f32.gmra.mrb[2].mxu0 %v6819_v25  ;;  %v7938_v56 = vand.u32 4294901760, %v6854_v50  ;;  %v7944_v43 = vand.u32 4294901760, %v6860_v63 }
  0xa3   :  { %v257_v57 = vsel %vm252_vm0, %v6868_v5, 0  ;;  %6099 = vmatpush3.bf16.msra.mxu0 %v6613_v28  ;;  %5510 = vmatprep.mubr.f32.mxu0 %v6854_v50  ;;  %v254_v0 = vsel %vm252_vm0, %v6871_v55, 0 }
  0xa4   :  { %v6881_v1 = vsub.f32 %v257_v57, %v257_v57  ;;  %v87_v16 = vpop.permute.xlu1 %86  ;;  %v84_v17 = vpop.permute.xlu0 %83  ;;  %6101 = vmatprep.subr.bf16.mxu0 %v6619_v31  ;;  %v6888_v20 = vsub.f32 %v254_v0, %v254_v0  ;;  %v6893_v36 = vsub.f32 %v6854_v50, %v7938_v56 }
  0xa5   :  { %vm157_vm9 = vcmp.eq.s32.totalorder %v87_v16, %v6784_v3  ;;  %vm156_vm10 = vcmp.eq.s32.totalorder %v84_v17, %v6784_v3 }
  0xa6   :  { %8017 = vst [vmem:[#allocation28_spill] sm:$0xff] %v6893_v36  ;;  %v6903_v45 = vsel %vm157_vm9, 1.0, %v7945_v47  ;;  %v6906_v57 = vsel %vm156_vm10, 1.0, %v7945_v47  ;;  %5511 = vmatmul.mubr.f32.gmra.mrb[4].mxu0 %v6860_v63  ;;  %v7942_v0 = vand.u32 4294901760, %v6888_v20  ;;  %v7943_v16 = vand.u32 4294901760, %v6881_v1 }
  0xa7   :  { %v263_v17 = vsel %vm252_vm0, %v6903_v45, 0  ;;  %v260_v52 = vsel %vm252_vm0, %v6906_v57, 0  ;;  %6103 = vmatpush3.bf16.msra.mxu0 %v6619_v31  ;;  %5527 = vmatprep.mubr.f32.mxu0 %v1866_v14 }
  0xa8   :  { %v6918_v39 = vsub.f32 %v263_v17, %v263_v17  ;;  %v6920_v56 = vsub.f32 %v260_v52, %v260_v52  ;;  %v93_v32 = vpop.permute.xlu1 %92  ;;  %v90_v15 = vpop.permute.xlu0 %89  ;;  %5525 = vmatprep.subr.mxu0 %v6645_v53  ;;  %v346_v27 = vsub.f32 %v6888_v20, %v7942_v0  ;;  %v356_v14 = vsub.f32 %v6881_v1, %v7943_v16 }
  0xa9   :  { %vm159_vm11 = vcmp.eq.s32.totalorder %v93_v32, %v6784_v3  ;;  %vm158_vm12 = vcmp.eq.s32.totalorder %v90_v15, %v6784_v3  ;;  %v6933_v52 = vsub.f32 %v6667_v62, %v6693_v8  ;;  %v6938_v17 = vsub.f32 %v6860_v63, %v7944_v43 }
  0xaa   :  { %v6941_v40 = vsel %vm159_vm11, 1.0, %v7945_v47  ;;  %v6944_v0 = vsel %vm158_vm12, 1.0, %v7945_v47  ;;  %v347_v16 = vand.u32 4294901760, %v346_v27  ;;  %v357_v51 = vand.u32 4294901760, %v356_v14 }
  0xab   :  { %8018 = vst [vmem:[#allocation29_spill] sm:$0xff] %v6938_v17  ;;  %v269_v15 = vsel %vm252_vm0, %v6941_v40, 0  ;;  %v266_v62 = vsel %vm252_vm0, %v6944_v0, 0  ;;  %5526 = vmatpush3.msra.mxu0 %v6645_v53  ;;  %v7947_v32 = vand.u32 4294901760, %v6920_v56  ;;  %v7948_v43 = vand.u32 4294901760, %v6918_v39 }
  0xac   :  { %v6953_v17 = vsub.f32 %v269_v15, %v269_v15  ;;  %v6955_v36 = vsub.f32 %v266_v62, %v266_v62  ;;  %v8019_v47 = vand.u32 4294901760, %v6817_v24  ;;  %6105 = vmatprep.subr.bf16.mxu0 %v6104_v18  ;;  %v8020_v27 = vand.u32 4294901760, %v6800_v6  ;;  %5182 = vmatprep.mubr.f32.mxu1 %v347_v16 }
  0xad   :  { %v366_v14 = vsub.f32 %v6920_v56, %v7947_v32  ;;  %v6965_v4 = vand.u32 4294901760, %v6933_v52  ;;  %v376_v15 = vsub.f32 %v6918_v39, %v7948_v43  ;;  %5183 = vmatmul.mubr.f32.vlgmr.msra.gmra.mrb[0].mxu1 %v357_v51  ;;  %v8021_v6 = vand.u32 4294901760, %v6623_v34 }
  0xae   :  { %5528 = vmatmul.mubr.f32.vlgmr.msra.gmra.mrb[0].mxu0 %v8019_v47  ;;  %v7950_v47 = vand.u32 4294901760, %v6955_v36  ;;  %5927 = vmatpush3.bf16.msra.mxu1 %v6716_v12  ;;  %v8023_v16 = vand.u32 4294901760, %v6819_v25  ;;  %v8024_v51 = vand.u32 4294901760, %v6854_v50  ;;  %v8026_v50 = vand.u32 4294901760, %v6860_v63  ;;  %v117_v63 = vpop.permute.xlu1 %116 }
  0xaf   :  { %5530 = vmatprep.mubr.f32.mxu0 %v8020_v27  ;;  %6107 = vmatpush3.bf16.msra.mxu0 %v6104_v18  ;;  %v367_v24 = vand.u32 4294901760, %v366_v14  ;;  %v8022_v18 = vand.u32 4294901760, %v6625_v35  ;;  %v7949_v27 = vand.u32 4294901760, %v6953_v17  ;;  %v377_v32 = vand.u32 4294901760, %v376_v15  ;;  %v2543_v35 = vld [vmem:[#allocation2 + $0xd8] sm:$0xff] }
  0xb0   :  { %6109 = vmatprep.subr.bf16.mxu0 %v6108_v37  ;;  %v386_v43 = vsub.f32 %v6955_v36, %v7950_v47  ;;  %5929 = vmatprep.subr.bf16.mxu1 %v6704_v23  ;;  %v6991_v15 = vand.u32 4294901760, %v6675_v2  ;;  %vm167_vm14 = vcmp.eq.s32.totalorder %v117_v63, %v6784_v3 }
  0xb1   :  { %v6112_v62 = vpack.c.bf16 %v8022_v18, %v8021_v6  ;;  %v396_v14 = vsub.f32 %v6953_v17, %v7949_v27  ;;  %v449_v6 = vsub.f32 %v6933_v52, %v6965_v4  ;;  %5185 = vmatprep.mubr.f32.mxu1 %v367_v24 }
  0xb2   :  { %5531 = vmatmul.mubr.f32.gmra.mrb[2].mxu0 %v8023_v16  ;;  %v387_v12 = vand.u32 4294901760, %v386_v43  ;;  %5186 = vmatmul.mubr.f32.gmra.mrb[2].mxu1 %v377_v32  ;;  %8025 = vst [vmem:[#allocation30_spill] sm:$0xff] %v6991_v15  ;;  %v2538_v43 = vld [vmem:[#allocation2 + $0xb0] sm:$0xff]  ;;  %v8027_v32 = vmov 0.0  }
  0xb3   :  { %5533 = vmatprep.mubr.f32.mxu0 %v8024_v51  ;;  %6111 = vmatpush3.bf16.msra.mxu0 %v6108_v37  ;;  %v397_v25 = vand.u32 4294901760, %v396_v14  ;;  %v450_v37 = vand.u32 4294901760, %v449_v6  ;;  %v2566_v16 = vand.u32 4294901760, %v2538_v43  ;;  %v2539_v14 = vld [vmem:[#allocation2 + $0xb8] sm:$0xff]  ;;  %v2540_v6 = vld [vmem:[#allocation2 + $0xc0] sm:$0xff] }
  0xb4   :  { %6113 = vmatprep.subr.bf16.mxu0 %v6112_v62  ;;  %5931 = vmatpush3.bf16.msra.mxu1 %v6704_v23  ;;  %v114_v23 = vpop.permute.xlu0 %113 }
  0xb5   :  { %5188 = vmatprep.mubr.f32.mxu1 %v387_v12  ;;  %5933 = vmatprep.subr.bf16.mxu1 %v6726_v33  ;;  %vm166_vm13 = vcmp.eq.s32.totalorder %v114_v23, %v6784_v3  ;;  %v2541_v12 = vld [vmem:[#allocation2 + $0xc8] sm:$0xff] }
  0xb6   :  { %5534 = vmatmul.mubr.f32.gmra.mrb[4].mxu0 %v8026_v50  ;;  %5189 = vmatmul.mubr.f32.gmra.mrb[4].mxu1 %v397_v25  ;;  %v7019_v24 = vsel %vm166_vm13, 1.0, %v8027_v32  ;;  %v2542_v25 = vld [vmem:[#allocation2 + $0xd0] sm:$0xff] }
  0xb7   :  { %6115 = vmatpush3.bf16.msra.mxu0 %v6112_v62  ;;  %5550 = vmatprep.mubr.msk.f32.mxu0 %vm252_vm0, %v6792_v54  ;;  %v123_v62 = vpop.permute.xlu1 %122  ;;  %v2545_v51 = vsel %vm252_vm0, %v7019_v24, 0  ;;  %v2578_v2 = vand.u32 4294901760, %v2542_v25 }
  0xb8   :  { %5548 = vmatprep.subr.mxu0 %v6991_v15  ;;  %5935 = vmatpush3.bf16.msra.mxu1 %v6726_v33  ;;  %v2537_v33 = vld [vmem:[#allocation2 + $0xa8] sm:$0xff]  ;;  %v120_v18 = vpop.permute.xlu0 %119  ;;  %v7050_v23 = vsub.f32 %v2545_v51, %v2545_v51  ;;  %vm169_vm1 = vcmp.eq.s32.totalorder %v123_v62, %v6784_v3 }
  0xb9   :  { %5205 = vmatprep.mubr.msk.f32.mxu1 %vm252_vm0, %v6871_v55  ;;  %5203 = vmatprep.subr.mxu1 %v450_v37  ;;  %vm168_vm15 = vcmp.eq.s32.totalorder %v120_v18, %v6784_v3  ;;  %v7073_v18 = vsel %vm169_vm1, 1.0, %v8027_v32  ;;  %vm4106_vm1 = vcmask 195584  }
  0xba   :  { %v7063_v51 = vsel %vm168_vm15, 1.0, %v8027_v32  ;;  %v8030_v42 = vand.u32 4294901760, %v7050_v23 }
  0xbb   :  { %5549 = vmatpush3.msra.mxu0 %v6991_v15  ;;  %v129_v47 = vpop.permute.xlu1 %128  ;;  %v2551_v10 = vsel %vm252_vm0, %v7063_v51, 0 }
  0xbc   :  { %5551 = vmatmul.mubr.msk.f32.vlgmr.msra.gmra.mrb[0].mxu0 %vm252_vm0, %v6808_v11  ;;  %6117 = vmatprep.subr.bf16.mxu0 %v6701_v19  ;;  %v126_v63 = vpop.permute.xlu0 %125  ;;  %vm171_vm3 = vcmp.eq.s32.totalorder %v129_v47, %v6784_v3 }
  0xbd   :  { %5553 = vmatprep.mubr.msk.f32.mxu0 %vm252_vm0, %v6789_v48  ;;  %6119 = vmatpush3.bf16.msra.mxu0 %v6701_v19  ;;  %vm170_vm2 = vcmp.eq.s32.totalorder %v126_v63, %v6784_v3 }
  0xbe   :  { %5204 = vmatpush3.msra.mxu1 %v450_v37  ;;  %6121 = vmatprep.subr.bf16.mxu0 %v6613_v28  ;;  %v7045_v37 = vsub.f32 %v2538_v43, %v2566_v16  ;;  %v2572_v43 = vand.u32 4294901760, %v2540_v6 }
  0xbf   :  { %5206 = vmatmul.mubr.msk.f32.vlgmr.msra.gmra.mrb[0].mxu1 %vm252_vm0, %v6868_v5  ;;  %5937 = vmatprep.subr.bf16.mxu1 %v6737_v38 }
  0xc0   :  { %5208 = vmatprep.mubr.msk.f32.mxu1 %vm252_vm0, %v6906_v57  ;;  %5939 = vmatpush3.bf16.msra.mxu1 %v6737_v38  ;;  %v2563_v38 = vand.u32 4294901760, %v2537_v33  ;;  %v8029_v63 = vand.u32 4294901760, %v7045_v37 }
  0xc1   :  { %5554 = vmatmul.mubr.msk.f32.gmra.mrb[2].mxu0 %vm252_vm0, %v6805_v7  ;;  %5941 = vmatprep.subr.bf16.mxu1 %v6747_v41 }
  0xc2   :  { %5556 = vmatprep.mubr.msk.f32.mxu0 %vm252_vm0, %v6835_v26  ;;  %6123 = vmatpush3.bf16.msra.mxu0 %v6613_v28  ;;  %v7043_v50 = vsub.f32 %v2537_v33, %v2563_v38  ;;  %v7055_v27 = vpack.c.bf16 %v2566_v16, %v2563_v38  ;;  %v2569_v33 = vand.u32 4294901760, %v2539_v14  ;;  %v7112_v16 = vsub.f32 %v2551_v10, %v2551_v10 }
  0xc3   :  { %5209 = vmatmul.mubr.msk.f32.gmra.mrb[2].mxu1 %vm252_vm0, %v6903_v45  ;;  %6125 = vmatprep.subr.bf16.mxu0 %v6619_v31 }
  0xc4   :  { %5211 = vmatprep.mubr.msk.f32.mxu1 %vm252_vm0, %v6944_v0  ;;  %5943 = vmatpush3.bf16.msra.mxu1 %v6747_v41  ;;  %v7048_v41 = vsel %vm167_vm14, 1.0, %v8027_v32  ;;  %v7079_v15 = vsub.f32 %v2539_v14, %v2569_v33  ;;  %v7087_v62 = vpack.c.bf16 %v2572_v43, %v2569_v33  ;;  %v7096_v14 = vsel %vm170_vm2, 1.0, %v8027_v32 }
  0xc5   :  { %5557 = vmatmul.mubr.msk.f32.gmra.mrb[4].mxu0 %vm252_vm0, %v6832_v13  ;;  %5945 = vmatprep.subr.bf16.mxu1 %v6756_v44  ;;  %v2548_v38 = vsel %vm252_vm0, %v7048_v41, 0  ;;  %v8028_v33 = vand.u32 4294901760, %v7043_v50  ;;  %v2557_v10 = vsel %vm252_vm0, %v7096_v14, 0  ;;  %vm4129_vm2 = vcmask 1040384  }
  0xc6   :  { %6127 = vmatpush3.bf16.msra.mxu0 %v6619_v31  ;;  %5573 = vmatprep.mubr.msk.f32.mxu0 %vm252_vm0, %v6792_v54  ;;  %v2575_v54 = vand.u32 4294901760, %v2541_v12  ;;  %v7969_v34 = vand.u32 4294901760, %v7079_v15 }
  0xc7   :  { %5212 = vmatmul.mubr.msk.f32.gmra.mrb[4].mxu1 %vm252_vm0, %v6941_v40  ;;  %5571 = vmatprep.subr.mxu0 %v6645_v53 }
  0xc8   :  { %5947 = vmatpush3.bf16.msra.mxu1 %v6756_v44  ;;  %5228 = vmatprep.mubr.f32.mxu1 %v6888_v20  ;;  %v7089_v44 = vsub.f32 %v2540_v6, %v2572_v43  ;;  %v7104_v6 = vpack.c.bf16 %v2578_v2, %v2575_v54  ;;  %v2698_v43 = vsub.f32 %v7043_v50, %v8028_v33 }
  0xc9   :  { %5226 = vmatprep.subr.mxu1 %v6933_v52  ;;  %v2637_v33 = vsub.f32 %v7050_v23, %v8030_v42  ;;  %v2712_v47 = vsub.f32 %v7079_v15, %v7969_v34  ;;  %v8033_v34 = vand.u32 4294901760, %v6888_v20 }
  0xca   :  { %5572 = vmatpush3.msra.mxu0 %v6645_v53  ;;  %v7133_v53 = vsub.f32 %v2542_v25, %v2578_v2  ;;  %v2699_v2 = vand.u32 4294901760, %v2698_v43  ;;  %v8031_v43 = vand.u32 4294901760, %v7089_v44 }
  0xcb   :  { %5574 = vmatmul.mubr.msk.f32.vlgmr.msra.gmra.mrb[0].mxu0 %vm252_vm0, %v6808_v11  ;;  %6129 = vmatprep.subr.bf16.mxu0 %v7055_v27  ;;  %v7091_v11 = vsub.f32 %v2548_v38, %v2548_v38  ;;  %v2705_v38 = vsub.f32 %v7045_v37, %v8029_v63  ;;  %v7131_v63 = vsub.f32 %v2541_v12, %v2575_v54  ;;  %v7145_v54 = vand.u32 4294901760, %v2543_v35 }
  0xcc   :  { %5227 = vmatpush3.msra.mxu1 %v6933_v52  ;;  %5576 = vmatprep.mubr.msk.f32.mxu0 %vm252_vm0, %v6789_v48  ;;  %v2554_v52 = vsel %vm252_vm0, %v7073_v18, 0  ;;  %v7117_v48 = vsel %vm171_vm3, 1.0, %v8027_v32  ;;  %v7147_v12 = vsub.f32 %v2557_v10, %v2557_v10  ;;  %v2638_v25 = vand.u32 4294901760, %v2637_v33 }
  0xcd   :  { %5229 = vmatmul.mubr.f32.vlgmr.msra.gmra.mrb[0].mxu1 %v6881_v1  ;;  %5949 = vmatprep.subr.bf16.mxu1 %v6635_v46  ;;  %v7136_v30 = vsub.f32 %v2554_v52, %v2554_v52  ;;  %v2560_v42 = vsel %vm252_vm0, %v7117_v48, 0  ;;  %v2706_v52 = vand.u32 4294901760, %v2705_v38  ;;  %v2719_v10 = vsub.f32 %v7089_v44, %v8031_v43 }
  0xce   :  { %6131 = vmatpush3.bf16.msra.mxu0 %v7055_v27  ;;  %5231 = vmatprep.mubr.f32.mxu1 %v6920_v56  ;;  %v8032_v38 = vand.u32 4294901760, %v7091_v11  ;;  %v2713_v29 = vand.u32 4294901760, %v2712_v47  ;;  %v8036_v31 = vand.u32 4294901760, %v7133_v53  ;;  %vm4131_vm3 = vcmask 1041408  }
  0xcf   :  { %5951 = vmatpush3.bf16.msra.mxu1 %v6635_v46  ;;  %5577 = vmatmul.mubr.msk.f32.gmra.mrb[2].mxu0 %vm252_vm0, %v6805_v7  ;;  %v7166_v7 = vsub.f32 %v2560_v42, %v2560_v42  ;;  %v6140_v43 = vpack.c.bf16 %v2706_v52, %v2699_v2 }
  0xd0   :  { %6133 = vmatprep.subr.bf16.mxu0 %v7087_v62  ;;  %5953 = vmatprep.subr.bf16.mxu1 %v6641_v49  ;;  %v2647_v33 = vsub.f32 %v7091_v11, %v8032_v38  ;;  %v2733_v2 = vsub.f32 %v7133_v53, %v8036_v31  ;;  %v8039_v31 = vand.u32 4294901760, %v6881_v1 }
  0xd1   :  { %5232 = vmatmul.mubr.f32.gmra.mrb[2].mxu1 %v6918_v39  ;;  %5579 = vmatprep.mubr.msk.f32.mxu0 %vm252_vm0, %v6835_v26  ;;  %v2720_v26 = vand.u32 4294901760, %v2719_v10  ;;  %v8038_v10 = vand.u32 4294901760, %v7147_v12 }
  0xd2   :  { %6135 = vmatpush3.bf16.msra.mxu0 %v7087_v62  ;;  %5234 = vmatprep.mubr.f32.mxu1 %v6955_v36  ;;  %v2648_v52 = vand.u32 4294901760, %v2647_v33 }
  0xd3   :  { %5955 = vmatpush3.bf16.msra.mxu1 %v6641_v49  ;;  %5580 = vmatmul.mubr.msk.f32.gmra.mrb[4].mxu0 %vm252_vm0, %v6832_v13  ;;  %v8034_v13 = vand.u32 4294901760, %v7112_v16  ;;  %v6144_v33 = vpack.c.bf16 %v2720_v26, %v2713_v29  ;;  %v8042_v26 = vand.u32 4294901760, %v6918_v39  ;;  %v60_v39 = vpop.permute.xlu0 %59 }
  0xd4   :  { %6137 = vmatprep.subr.bf16.mxu0 %v7104_v6  ;;  %5957 = vmatprep.subr.bf16.mxu1 %v6665_v61  ;;  %vm148_vm4 = vcmp.eq.s32.totalorder %v60_v39, %v6784_v3 }
  0xd5   :  { %5235 = vmatmul.mubr.f32.gmra.mrb[4].mxu1 %v6953_v17  ;;  %5596 = vmatprep.mubr.f32.mxu0 %v2638_v25  ;;  %v2657_v42 = vsub.f32 %v7112_v16, %v8034_v13  ;;  %v7180_v25 = vsub.f32 %v2543_v35, %v7145_v54  ;;  %v8037_v13 = vand.u32 4294901760, %v7136_v30  ;;  %v2734_v35 = vand.u32 4294901760, %v2733_v2  ;;  %v239_v2 = vld [vmem:[#allocation2 + $0x8] sm:$0xff] }
  0xd6   :  { %6139 = vmatpush3.bf16.msra.mxu0 %v7104_v6  ;;  %5251 = vmatprep.mubr.f32.mxu1 %v8033_v34  ;;  %v8035_v34 = vand.u32 4294901760, %v7131_v63 }
  0xd7   :  { %5959 = vmatpush3.bf16.msra.mxu1 %v6665_v61  ;;  %5594 = vmatprep.subr.mxu0 %v7145_v54  ;;  %v2667_v38 = vsub.f32 %v7136_v30, %v8037_v13  ;;  %v2658_v47 = vand.u32 4294901760, %v2657_v42  ;;  %v7199_v9 = vand.u32 4294901760, %v7180_v25  ;;  %v8040_v42 = vand.u32 4294901760, %v7166_v7 }
  0xd8   :  { %5249 = vmatprep.subr.mxu1 %v6693_v8  ;;  %v2726_v20 = vsub.f32 %v7131_v63, %v8035_v34  ;;  %v2677_v34 = vsub.f32 %v7147_v12, %v8038_v10  ;;  %v8041_v10 = vand.u32 4294901760, %v6920_v56  ;;  %v8043_v56 = vand.u32 4294901760, %v6955_v36  ;;  %v63_v36 = vpop.permute.xlu1 %62 }
  0xd9   :  { %v2668_v28 = vand.u32 4294901760, %v2667_v38  ;;  %v2740_v29 = vsub.f32 %v7180_v25, %v7199_v9  ;;  %vm149_vm5 = vcmp.eq.s32.totalorder %v63_v36, %v6784_v3 }
  0xda   :  { %5595 = vmatpush3.msra.mxu0 %v7145_v54  ;;  %v2727_v13 = vand.u32 4294901760, %v2726_v20  ;;  %v2678_v1 = vand.u32 4294901760, %v2677_v34 }
  0xdb   :  { %5250 = vmatpush3.msra.mxu1 %v6693_v8  ;;  %5597 = vmatmul.mubr.f32.vlgmr.msra.gmra.mrb[0].mxu0 %v2648_v52  ;;  %v2687_v52 = vsub.f32 %v7166_v7, %v8040_v42  ;;  %v243_v42 = vld [vmem:[#allocation2 + $0x28] sm:$0xff] }
  0xdc   :  { %6141 = vmatprep.subr.bf16.mxu0 %v6140_v43  ;;  %5252 = vmatmul.mubr.f32.vlgmr.msra.gmra.mrb[0].mxu1 %v8039_v31  ;;  %v6148_v38 = vpack.c.bf16 %v2734_v35, %v2727_v13  ;;  %v69_v35 = vpop.permute.xlu1 %68  ;;  %v1032_v31 = vand.u32 4294901760, %v239_v2  ;;  %v242_v13 = vld [vmem:[#allocation2 + $0x20] sm:$0xff] }
  0xdd   :  { %5961 = vmatprep.subr.bf16.mxu1 %v6774_v58  ;;  %5599 = vmatprep.mubr.f32.mxu0 %v2658_v47  ;;  %v2688_v20 = vand.u32 4294901760, %v2687_v52  ;;  %vm151_vm7 = vcmp.eq.s32.totalorder %v69_v35, %v6784_v3 }
  0xde   :  { %6143 = vmatpush3.bf16.msra.mxu0 %v6140_v43  ;;  %5254 = vmatprep.mubr.f32.mxu1 %v8041_v10  ;;  %v66_v43 = vpop.permute.xlu0 %65  ;;  %v7274_v10 = vsub.f32 %v239_v2, %v1032_v31  ;;  %v7299_v36 = vsel %vm151_vm7, 1.0, %v8027_v32 }
  0xdf   :  { %5963 = vmatpush3.bf16.msra.mxu1 %v6774_v58  ;;  %5600 = vmatmul.mubr.f32.gmra.mrb[2].mxu0 %v2668_v28  ;;  %v2741_v28 = vand.u32 4294901760, %v2740_v29  ;;  %v8044_v58 = vand.u32 4294901760, %v6953_v17  ;;  %v7253_v17 = vsel %vm148_vm4, 1.0, %v8027_v32  ;;  %vm150_vm6 = vcmp.eq.s32.totalorder %v66_v43, %v6784_v3 }
  0xe0   :  { %6145 = vmatprep.subr.bf16.mxu0 %v6144_v33  ;;  %5255 = vmatmul.mubr.f32.gmra.mrb[2].mxu1 %v8042_v26  ;;  %v1011_v47 = vsel %vm252_vm0, %v7253_v17, 0  ;;  %v1020_v35 = vsel %vm252_vm0, %v7299_v36, 0 }
  0xe1   :  { %5965 = vmatprep.subr.bf16.mxu1 %v6780_v59  ;;  %5602 = vmatprep.mubr.f32.mxu0 %v2678_v1  ;;  %v7279_v1 = vsel %vm149_vm5, 1.0, %v8027_v32 }
  0xe2   :  { %6147 = vmatpush3.bf16.msra.mxu0 %v6144_v33  ;;  %5257 = vmatprep.mubr.f32.mxu1 %v8043_v56  ;;  %v241_v33 = vld [vmem:[#allocation2 + $0x18] sm:$0xff]  ;;  %v72_v29 = vpop.permute.xlu0 %71  ;;  %v75_v56 = vpop.permute.xlu1 %74 }
  0xe3   :  { %5967 = vmatpush3.bf16.msra.mxu1 %v6780_v59  ;;  %5603 = vmatmul.mubr.f32.gmra.mrb[4].mxu0 %v2688_v20  ;;  %v6152_v59 = vpack.c.bf16 %v7045_v37, %v7043_v50  ;;  %v7288_v20 = vsel %vm150_vm6, 1.0, %v8027_v32  ;;  %vm152_vm8 = vcmp.eq.s32.totalorder %v72_v29, %v6784_v3  ;;  %vm153_vm9 = vcmp.eq.s32.totalorder %v75_v56, %v6784_v3  ;;  %v244_v29 = vld [vmem:[#allocation2 + $0x30] sm:$0xff] }
  0xe4   :  { %6149 = vmatprep.subr.bf16.mxu0 %v6148_v38  ;;  %5258 = vmatmul.mubr.f32.gmra.mrb[4].mxu1 %v8044_v58  ;;  %v1044_v58 = vand.u32 4294901760, %v243_v42 }
  0xe5   :  { %5969 = vmatprep.subr.bf16.mxu1 %v6782_v60  ;;  %5619 = vmatprep.mubr.msk.f32.mxu0 %vm252_vm0, %v7019_v24 }
  0xe6   :  { %6151 = vmatpush3.bf16.msra.mxu0 %v6148_v38  ;;  %5274 = vmatprep.mubr.msk.f32.mxu1 %vm252_vm0, %v6871_v55  ;;  %v1038_v38 = vand.u32 4294901760, %v241_v33 }
  0xe7   :  { %5971 = vmatpush3.bf16.msra.mxu1 %v6782_v60  ;;  %5617 = vmatprep.subr.mxu0 %v2741_v28  ;;  %v6156_v60 = vpack.c.bf16 %v7089_v44, %v7079_v15 }
  0xe8   :  { %5272 = vmatprep.subr.mxu1 %v6965_v4 }
  0xea   :  { %5618 = vmatpush3.msra.mxu0 %v2741_v28  ;;  %v1041_v28 = vand.u32 4294901760, %v242_v13 }
  0xeb   :  { %5273 = vmatpush3.msra.mxu1 %v6965_v4  ;;  %5620 = vmatmul.mubr.msk.f32.vlgmr.msra.gmra.mrb[0].mxu0 %vm252_vm0, %v7048_v41  ;;  %v6160_v4 = vpack.c.bf16 %v7133_v53, %v7131_v63 }
  0xec   :  { %6153 = vmatprep.subr.bf16.mxu0 %v6152_v59  ;;  %5275 = vmatmul.mubr.msk.f32.vlgmr.msra.gmra.mrb[0].mxu1 %vm252_vm0, %v6868_v5 }
  0xed   :  { %5973 = vmatprep.subr.bf16.mxu1 %v6635_v46  ;;  %5622 = vmatprep.mubr.msk.f32.mxu0 %vm252_vm0, %v7063_v51 }
  0xee   :  { %6155 = vmatpush3.bf16.msra.mxu0 %v6152_v59  ;;  %5277 = vmatprep.mubr.msk.f32.mxu1 %vm252_vm0, %v6906_v57  ;;  %v1014_v59 = vsel %vm252_vm0, %v7279_v1, 0 }
  0xef   :  { %5975 = vmatpush3.bf16.msra.mxu1 %v6635_v46  ;;  %5623 = vmatmul.mubr.msk.f32.gmra.mrb[2].mxu0 %vm252_vm0, %v7073_v18  ;;  %v238_v46 = vld [vmem:[#allocation2] sm:$0xff]  ;;  %v7316_v2 = vsub.f32 %v1014_v59, %v1014_v59  ;;  %v7357_v59 = vsub.f32 %v242_v13, %v1041_v28  ;;  %v7371_v13 = vand.u32 4294901760, %v244_v29 }
  0xf0   :  { %6157 = vmatprep.subr.bf16.mxu0 %v6156_v60  ;;  %5278 = vmatmul.mubr.msk.f32.gmra.mrb[2].mxu1 %vm252_vm0, %v6903_v45  ;;  %v1029_v34 = vand.u32 4294901760, %v238_v46 }
  0xf1   :  { %5977 = vmatprep.subr.bf16.mxu1 %v6641_v49  ;;  %5625 = vmatprep.mubr.msk.f32.mxu0 %vm252_vm0, %v7096_v14  ;;  %v8050_v21 = vand.u32 4294901760, %v7357_v59 }
  0xf2   :  { %6159 = vmatpush3.bf16.msra.mxu0 %v6156_v60  ;;  %5280 = vmatprep.mubr.msk.f32.mxu1 %vm252_vm0, %v6944_v0  ;;  %v7272_v52 = vsub.f32 %v238_v46, %v1029_v34  ;;  %v7974_v60 = vand.u32 4294901760, %v7274_v10  ;;  %v7314_v46 = vsub.f32 %v241_v33, %v1038_v38 }
  0xf3   :  { %5979 = vmatpush3.bf16.msra.mxu1 %v6641_v49  ;;  %5626 = vmatmul.mubr.msk.f32.gmra.mrb[4].mxu0 %vm252_vm0, %v7117_v48  ;;  %v240_v49 = vld [vmem:[#allocation2 + $0x10] sm:$0xff] }
  0xf4   :  { %6161 = vmatprep.subr.bf16.mxu0 %v6160_v4  ;;  %5281 = vmatmul.mubr.msk.f32.gmra.mrb[4].mxu1 %vm252_vm0, %v6941_v40  ;;  %v1035_v26 = vand.u32 4294901760, %v240_v49  ;;  %v7975_v39 = vand.u32 4294901760, %v7272_v52  ;;  %v7977_v56 = vand.u32 4294901760, %v7314_v46 }
  0xf5   :  { %5981 = vmatprep.subr.bf16.mxu1 %v6665_v61  ;;  %5642 = vmatprep.mubr.f32.mxu0 %v7050_v23 }
  0xf6   :  { %6163 = vmatpush3.bf16.msra.mxu0 %v6160_v4  ;;  %5297 = vmatprep.mubr.msk.f32.mxu1 %vm252_vm0, %v6871_v55  ;;  %v7281_v55 = vsub.f32 %v1011_v47, %v1011_v47  ;;  %v7305_v4 = vsub.f32 %v240_v49, %v1035_v26  ;;  %v7312_v43 = vpack.c.bf16 %v1038_v38, %v1035_v26 }
  0xf7   :  { %5983 = vmatpush3.bf16.msra.mxu1 %v6665_v61  ;;  %5640 = vmatprep.subr.mxu0 %v7180_v25  ;;  %v7285_v61 = vpack.c.bf16 %v1032_v31, %v1029_v34  ;;  %v7330_v47 = vpack.c.bf16 %v1044_v58, %v1041_v28  ;;  %v1164_v34 = vsub.f32 %v7272_v52, %v7975_v39 }
  0xf8   :  { %5295 = vmatprep.subr.mxu1 %v6693_v8  ;;  %v1171_v31 = vsub.f32 %v7274_v10, %v7974_v60  ;;  %v7978_v26 = vand.u32 4294901760, %v7305_v4  ;;  %v7362_v60 = vsub.f32 %v1020_v35, %v1020_v35 }
  0xfa   :  { %5641 = vmatpush3.msra.mxu0 %v7180_v25  ;;  %v7976_v25 = vand.u32 4294901760, %v7281_v55  ;;  %v1172_v35 = vand.u32 4294901760, %v1171_v31  ;;  %v8046_v31 = vand.u32 4294901760, %v7316_v2 }
  0xfb   :  { %5296 = vmatpush3.msra.mxu1 %v6693_v8  ;;  %5643 = vmatmul.mubr.f32.vlgmr.msra.gmra.mrb[0].mxu0 %v7091_v11  ;;  %v1017_v8 = vsel %vm252_vm0, %v7288_v20, 0 }
  0xfc   :  { %6165 = vmatprep.subr.bf16.mxu0 %v7055_v27  ;;  %5298 = vmatmul.mubr.msk.f32.vlgmr.msra.gmra.mrb[0].mxu1 %vm252_vm0, %v6868_v5  ;;  %v7321_v5 = vsel %vm152_vm8, 1.0, %v8027_v32  ;;  %v7338_v49 = vsub.f32 %v1017_v8, %v1017_v8  ;;  %v1103_v33 = vsub.f32 %v7281_v55, %v7976_v25  ;;  %v7359_v8 = vsub.f32 %v243_v42, %v1044_v58 }
  0xfd   :  { %5985 = vmatprep.subr.bf16.mxu1 %v7285_v61  ;;  %5645 = vmatprep.mubr.f32.mxu0 %v7112_v16  ;;  %v1023_v38 = vsel %vm252_vm0, %v7321_v5, 0  ;;  %v1165_v42 = vand.u32 4294901760, %v1164_v34  ;;  %v8045_v25 = vand.u32 4294901760, %v7050_v23  ;;  %v1178_v34 = vsub.f32 %v7305_v4, %v7978_v26 }
  0xfe   :  { %6167 = vmatpush3.bf16.msra.mxu0 %v7055_v27  ;;  %5300 = vmatprep.mubr.msk.f32.mxu1 %vm252_vm0, %v6906_v57  ;;  %v7343_v57 = vsel %vm153_vm9, 1.0, %v8027_v32  ;;  %v7373_v28 = vsub.f32 %v1023_v38, %v1023_v38  ;;  %v1104_v58 = vand.u32 4294901760, %v1103_v33  ;;  %v1185_v38 = vsub.f32 %v7314_v46, %v7977_v56 }
  0xff   :  { %5987 = vmatpush3.bf16.msra.mxu1 %v7285_v61  ;;  %5646 = vmatmul.mubr.f32.gmra.mrb[2].mxu0 %v7136_v30  ;;  %v1026_v39 = vsel %vm252_vm0, %v7343_v57, 0  ;;  %v1113_v33 = vsub.f32 %v7316_v2, %v8046_v31  ;;  %v8048_v56 = vand.u32 4294901760, %v7045_v37  ;;  %v7409_v23 = vsub.f32 %v244_v29, %v7371_v13 }
 0x100   :  { %6169 = vmatprep.subr.bf16.mxu0 %v7087_v62  ;;  %5301 = vmatmul.mubr.msk.f32.gmra.mrb[2].mxu1 %vm252_vm0, %v6903_v45  ;;  %v1179_v45 = vand.u32 4294901760, %v1178_v34  ;;  %v1186_v22 = vand.u32 4294901760, %v1185_v38  ;;  %v8051_v37 = vand.u32 4294901760, %v7359_v8  ;;  %v8053_v34 = vand.u32 4294901760, %v7091_v11 }
 0x101   :  { %5989 = vmatprep.subr.bf16.mxu1 %v7312_v43  ;;  %5648 = vmatprep.mubr.f32.mxu0 %v7147_v12  ;;  %v8054_v38 = vand.u32 4294901760, %v7079_v15  ;;  %v8056_v29 = vand.u32 4294901760, %v7112_v16  ;;  %v8059_v16 = vand.u32 4294901760, %v7131_v63 }
 0x102   :  { %6171 = vmatpush3.bf16.msra.mxu0 %v7087_v62  ;;  %5303 = vmatprep.mubr.msk.f32.mxu1 %vm252_vm0, %v6944_v0  ;;  %v7393_v0 = vsub.f32 %v1026_v39, %v1026_v39  ;;  %v8049_v39 = vand.u32 4294901760, %v7338_v49  ;;  %v6000_v11 = vpack.c.bf16 %v1186_v22, %v1179_v45  ;;  %v8060_v22 = vand.u32 4294901760, %v7133_v53 }
 0x103   :  { %5991 = vmatpush3.bf16.msra.mxu1 %v7312_v43  ;;  %5649 = vmatmul.mubr.f32.gmra.mrb[4].mxu0 %v7166_v7  ;;  %v6008_v53 = vpack.c.bf16 %v7274_v10, %v7272_v52 }
 0x104   :  { %6173 = vmatprep.subr.bf16.mxu0 %v7104_v6  ;;  %5304 = vmatmul.mubr.msk.f32.gmra.mrb[4].mxu1 %vm252_vm0, %v6941_v40  ;;  %v5996_v40 = vpack.c.bf16 %v1172_v35, %v1165_v42  ;;  %v1123_v31 = vsub.f32 %v7338_v49, %v8049_v39  ;;  %v1114_v42 = vand.u32 4294901760, %v1113_v33  ;;  %v8052_v35 = vand.u32 4294901760, %v7362_v60 }
 0x105   :  { %5993 = vmatprep.subr.bf16.mxu1 %v7330_v47  ;;  %5665 = vmatprep.mubr.f32.mxu0 %v8045_v25  ;;  %v8047_v25 = vand.u32 4294901760, %v7043_v50  ;;  %v1192_v50 = vsub.f32 %v7357_v59, %v8050_v21  ;;  %v8055_v33 = vand.u32 4294901760, %v7089_v44  ;;  %v8057_v44 = vand.u32 4294901760, %v7393_v0 }
 0x106   :  { %6175 = vmatpush3.bf16.msra.mxu0 %v7104_v6  ;;  %5320 = vmatprep.mubr.f32.mxu1 %v1104_v58  ;;  %v7989_v58 = vand.u32 4294901760, %v7373_v28  ;;  %v1124_v21 = vand.u32 4294901760, %v1123_v31  ;;  %v6184_v45 = vpack.c.bf16 %v8060_v22, %v8059_v16 }
 0x107   :  { %5995 = vmatpush3.bf16.msra.mxu1 %v7330_v47  ;;  %5663 = vmatprep.subr.mxu0 %v7145_v54  ;;  %v6176_v26 = vpack.c.bf16 %v8048_v56, %v8047_v25  ;;  %v1199_v56 = vsub.f32 %v7359_v8, %v8051_v37  ;;  %v1133_v25 = vsub.f32 %v7362_v60, %v8052_v35  ;;  %v7433_v35 = vand.u32 4294901760, %v7409_v23 }
 0x108   :  { %5318 = vmatprep.subr.mxu1 %v7371_v13  ;;  %v6180_v39 = vpack.c.bf16 %v8055_v33, %v8054_v38  ;;  %v1143_v37 = vsub.f32 %v7373_v28, %v7989_v58  ;;  %v1153_v31 = vsub.f32 %v7393_v0, %v8057_v44  ;;  %v8058_v38 = vand.u32 4294901760, %v7136_v30 }
 0x109   :  { %v1134_v15 = vand.u32 4294901760, %v1133_v25  ;;  %v6012_v25 = vpack.c.bf16 %v7314_v46, %v7305_v4 }
 0x10a   :  { %5664 = vmatpush3.msra.mxu0 %v7145_v54  ;;  %v1144_v33 = vand.u32 4294901760, %v1143_v37  ;;  %v1154_v30 = vand.u32 4294901760, %v1153_v31 }
 0x10b   :  { %5319 = vmatpush3.msra.mxu1 %v7371_v13  ;;  %5666 = vmatmul.mubr.f32.vlgmr.msra.gmra.mrb[0].mxu0 %v8053_v34  ;;  %v1193_v34 = vand.u32 4294901760, %v1192_v50  ;;  %v8061_v50 = vand.u32 4294901760, %v7147_v12  ;;  %v135_v12 = vpop.permute.xlu1 %134 }
 0x10c   :  { %6177 = vmatprep.subr.bf16.mxu0 %v6176_v26  ;;  %5321 = vmatmul.mubr.f32.vlgmr.msra.gmra.mrb[0].mxu1 %v1114_v42  ;;  %v1200_v42 = vand.u32 4294901760, %v1199_v56  ;;  %vm173_vm11 = vcmp.eq.s32.totalorder %v135_v12, %v6784_v3 }
 0x10d   :  { %5997 = vmatprep.subr.bf16.mxu1 %v5996_v40  ;;  %5668 = vmatprep.mubr.f32.mxu0 %v8056_v29  ;;  %v7500_v44 = vsel %vm173_vm11, 1.0, %v8027_v32 }
 0x10e   :  { %6179 = vmatpush3.bf16.msra.mxu0 %v6176_v26  ;;  %5323 = vmatprep.mubr.f32.mxu1 %v1124_v21  ;;  %v1206_v26 = vsub.f32 %v7409_v23, %v7433_v35  ;;  %v6004_v56 = vpack.c.bf16 %v1200_v42, %v1193_v34  ;;  %v3307_v21 = vld [vmem:[#allocation2 + $0xe0] sm:$0xff]  ;;  %v3309_v42 = vld [vmem:[#allocation2 + $0xf0] sm:$0xff] }
 0x10f   :  { %5999 = vmatpush3.bf16.msra.mxu1 %v5996_v40  ;;  %5669 = vmatmul.mubr.f32.gmra.mrb[2].mxu0 %v8058_v38  ;;  %v8062_v40 = vand.u32 4294901760, %v7166_v7  ;;  %v132_v7 = vpop.permute.xlu0 %131  ;;  %v141_v37 = vpop.permute.xlu1 %140 }
 0x110   :  { %6181 = vmatprep.subr.bf16.mxu0 %v6180_v39  ;;  %5324 = vmatmul.mubr.f32.gmra.mrb[2].mxu1 %v1134_v15  ;;  %v1207_v63 = vand.u32 4294901760, %v1206_v26  ;;  %vm172_vm10 = vcmp.eq.s32.totalorder %v132_v7, %v6784_v3  ;;  %v3310_v15 = vld [vmem:[#allocation2 + $0xf8] sm:$0xff]  ;;  %vm175_vm13 = vcmp.eq.s32.totalorder %v141_v37, %v6784_v3 }
 0x111   :  { %6001 = vmatprep.subr.bf16.mxu1 %v6000_v11  ;;  %5671 = vmatprep.mubr.f32.mxu0 %v8061_v50  ;;  %v3339_v50 = vand.u32 4294901760, %v3309_v42 }
 0x112   :  { %6183 = vmatpush3.bf16.msra.mxu0 %v6180_v39  ;;  %5326 = vmatprep.mubr.f32.mxu1 %v1144_v33  ;;  %v3308_v39 = vld [vmem:[#allocation2 + $0xe8] sm:$0xff]  ;;  %v3311_v33 = vld [vmem:[#allocation2 + $0x100] sm:$0xff] }
 0x113   :  { %6003 = vmatpush3.bf16.msra.mxu1 %v6000_v11  ;;  %5672 = vmatmul.mubr.f32.gmra.mrb[4].mxu0 %v8062_v40  ;;  %v138_v29 = vpop.permute.xlu0 %137  ;;  %v3336_v34 = vand.u32 4294901760, %v3308_v39  ;;  %v147_v26 = vpop.permute.xlu1 %146  ;;  %v3318_v40 = vsel %vm252_vm0, %v7500_v44, 0 }
 0x114   :  { %6185 = vmatprep.subr.bf16.mxu0 %v6184_v45  ;;  %5327 = vmatmul.mubr.f32.gmra.mrb[4].mxu1 %v1154_v30  ;;  %vm174_vm12 = vcmp.eq.s32.totalorder %v138_v29, %v6784_v3  ;;  %v3345_v30 = vand.u32 4294901760, %v3311_v33  ;;  %vm177_vm15 = vcmp.eq.s32.totalorder %v147_v26, %v6784_v3 }
 0x115   :  { %6005 = vmatprep.subr.bf16.mxu1 %v6004_v56  ;;  %5688 = vmatprep.mubr.msk.f32.mxu0 %vm252_vm0, %v7019_v24  ;;  %v7510_v16 = vsel %vm174_vm12, 1.0, %v8027_v32 }
 0x116   :  { %6187 = vmatpush3.bf16.msra.mxu0 %v6184_v45  ;;  %5343 = vmatprep.mubr.msk.f32.mxu1 %vm252_vm0, %v7253_v17  ;;  %v7515_v45 = vsub.f32 %v3308_v39, %v3336_v34  ;;  %v7583_v26 = vsub.f32 %v3311_v33, %v3345_v30 }
 0x117   :  { %6007 = vmatpush3.bf16.msra.mxu1 %v6004_v56  ;;  %5686 = vmatprep.subr.mxu0 %v7199_v9  ;;  %v144_v38 = vpop.permute.xlu0 %143  ;;  %v3342_v56 = vand.u32 4294901760, %v3310_v15 }
 0x118   :  { %5341 = vmatprep.subr.mxu1 %v1207_v63  ;;  %vm176_vm14 = vcmp.eq.s32.totalorder %v144_v38, %v6784_v3  ;;  %v7983_v29 = vand.u32 4294901760, %v7515_v45 }
 0x11a   :  { %5687 = vmatpush3.msra.mxu0 %v7199_v9  ;;  %v7476_v9 = vsel %vm172_vm10, 1.0, %v8027_v32 }
 0x11b   :  { %5342 = vmatpush3.msra.mxu1 %v1207_v63  ;;  %5689 = vmatmul.mubr.msk.f32.vlgmr.msra.gmra.mrb[0].mxu0 %vm252_vm0, %v7048_v41  ;;  %v3315_v11 = vsel %vm252_vm0, %v7476_v9, 0  ;;  %v7524_v63 = vsel %vm175_vm13, 1.0, %v8027_v32 }
 0x11c   :  { %6189 = vmatprep.subr.bf16.mxu0 %v7055_v27  ;;  %5344 = vmatmul.mubr.msk.f32.vlgmr.msra.gmra.mrb[0].mxu1 %vm252_vm0, %v7279_v1  ;;  %v7502_v31 = vsub.f32 %v3315_v11, %v3315_v11  ;;  %v3324_v39 = vsel %vm252_vm0, %v7524_v63, 0  ;;  %v7559_v11 = vsel %vm177_vm15, 1.0, %v8027_v32 }
 0x11d   :  { %6009 = vmatprep.subr.bf16.mxu1 %v6008_v53  ;;  %5691 = vmatprep.mubr.msk.f32.mxu0 %vm252_vm0, %v7063_v51 }
 0x11e   :  { %6191 = vmatpush3.bf16.msra.mxu0 %v7055_v27  ;;  %5346 = vmatprep.mubr.msk.f32.mxu1 %vm252_vm0, %v7288_v20  ;;  %v6016_v27 = vpack.c.bf16 %v7359_v8, %v7357_v59  ;;  %v7988_v12 = vand.u32 4294901760, %v7502_v31 }
 0x11f   :  { %6011 = vmatpush3.bf16.msra.mxu1 %v6008_v53  ;;  %5692 = vmatmul.mubr.msk.f32.gmra.mrb[2].mxu0 %vm252_vm0, %v7073_v18  ;;  %v3321_v53 = vsel %vm252_vm0, %v7510_v16, 0 }
 0x120   :  { %6193 = vmatprep.subr.bf16.mxu0 %v7087_v62  ;;  %5347 = vmatmul.mubr.msk.f32.gmra.mrb[2].mxu1 %vm252_vm0, %v7299_v36  ;;  %v7554_v37 = vsub.f32 %v3321_v53, %v3321_v53  ;;  %v3407_v3 = vsub.f32 %v7502_v31, %v7988_v12  ;;  %v3330_v53 = vsel %vm252_vm0, %v7559_v11, 0 }
 0x121   :  { %6013 = vmatprep.subr.bf16.mxu1 %v6012_v25  ;;  %5694 = vmatprep.mubr.msk.f32.mxu0 %vm252_vm0, %v7096_v14 }
 0x122   :  { %6195 = vmatpush3.bf16.msra.mxu0 %v7087_v62  ;;  %5349 = vmatprep.mubr.msk.f32.mxu1 %vm252_vm0, %v7321_v5  ;;  %v3333_v62 = vand.u32 4294901760, %v3307_v21 }
 0x123   :  { %6015 = vmatpush3.bf16.msra.mxu1 %v6012_v25  ;;  %5695 = vmatmul.mubr.msk.f32.gmra.mrb[4].mxu0 %vm252_vm0, %v7117_v48 }
 0x124   :  { %6197 = vmatprep.subr.bf16.mxu0 %v7104_v6  ;;  %5350 = vmatmul.mubr.msk.f32.gmra.mrb[4].mxu1 %vm252_vm0, %v7343_v57  ;;  %v7513_v22 = vsub.f32 %v3307_v21, %v3333_v62  ;;  %v7543_v21 = vsub.f32 %v3309_v42, %v3339_v50 }
 0x125   :  { %6017 = vmatprep.subr.bf16.mxu1 %v6016_v27  ;;  %5711 = vmatprep.mubr.msk.f32.mxu0 %vm252_vm0, %v7019_v24  ;;  %v3312_v24 = vld [vmem:[#allocation2 + $0x108] sm:$0xff] }
 0x126   :  { %6199 = vmatpush3.bf16.msra.mxu0 %v7104_v6  ;;  %5366 = vmatprep.mubr.f32.mxu1 %v7281_v55  ;;  %v7518_v6 = vpack.c.bf16 %v3336_v34, %v3333_v62  ;;  %v3348_v7 = vand.u32 4294901760, %v3312_v24  ;;  %v7984_v25 = vand.u32 4294901760, %v7513_v22  ;;  %v7985_v38 = vand.u32 4294901760, %v7543_v21 }
 0x127   :  { %6019 = vmatpush3.bf16.msra.mxu1 %v6016_v27  ;;  %5709 = vmatprep.subr.mxu0 %v7145_v54  ;;  %v7537_v27 = vsel %vm176_vm14, 1.0, %v8027_v32 }
 0x128   :  { %5364 = vmatprep.subr.mxu1 %v7409_v23  ;;  %v7563_v62 = vpack.c.bf16 %v3348_v7, %v3345_v30  ;;  %v3327_v34 = vsel %vm252_vm0, %v7537_v27, 0  ;;  %v3468_v42 = vsub.f32 %v7513_v22, %v7984_v25  ;;  %v7992_v25 = vand.u32 4294901760, %v7583_v26 }
 0x12a   :  { %5710 = vmatpush3.msra.mxu0 %v7145_v54  ;;  %v7541_v54 = vpack.c.bf16 %v3342_v56, %v3339_v50  ;;  %v7585_v50 = vsub.f32 %v3312_v24, %v3348_v7  ;;  %v3408_v24 = vand.u32 4294901760, %v3407_v3  ;;  %v3469_v30 = vand.u32 4294901760, %v3468_v42 }
 0x12b   :  { %5365 = vmatpush3.msra.mxu1 %v7409_v23  ;;  %5712 = vmatmul.mubr.msk.f32.vlgmr.msra.gmra.mrb[0].mxu0 %vm252_vm0, %v7048_v41  ;;  %v7545_v23 = vsub.f32 %v3310_v15, %v3342_v56  ;;  %v7547_v41 = vsub.f32 %v3318_v40, %v3318_v40  ;;  %v3475_v15 = vsub.f32 %v7515_v45, %v7983_v29 }
 0x12c   :  { %6201 = vmatprep.subr.bf16.mxu0 %v7518_v6  ;;  %5367 = vmatmul.mubr.f32.vlgmr.msra.gmra.mrb[0].mxu1 %v7316_v2  ;;  %v7588_v40 = vsub.f32 %v3324_v39, %v3324_v39  ;;  %v7595_v29 = vsub.f32 %v3327_v34, %v3327_v34  ;;  %v3482_v39 = vsub.f32 %v7543_v21, %v7985_v38  ;;  %v8064_v38 = vand.u32 4294901760, %v7281_v55 }
 0x12d   :  { %6021 = vmatprep.subr.bf16.mxu1 %v7285_v61  ;;  %5714 = vmatprep.mubr.msk.f32.mxu0 %vm252_vm0, %v7063_v51  ;;  %v3313_v51 = vld [vmem:[#allocation2 + $0x110] sm:$0xff]  ;;  %v7987_v56 = vand.u32 4294901760, %v7547_v41  ;;  %v3476_v7 = vand.u32 4294901760, %v3475_v15  ;;  %v7618_v42 = vsub.f32 %v3330_v53, %v3330_v53  ;;  %v3496_v55 = vsub.f32 %v7583_v26, %v7992_v25 }
 0x12e   :  { %6203 = vmatpush3.bf16.msra.mxu0 %v7518_v6  ;;  %5369 = vmatprep.mubr.f32.mxu1 %v7338_v49  ;;  %v7599_v33 = vand.u32 4294901760, %v3313_v51  ;;  %v7993_v15 = vand.u32 4294901760, %v7588_v40  ;;  %v3483_v12 = vand.u32 4294901760, %v3482_v39 }
 0x12f   :  { %6023 = vmatpush3.bf16.msra.mxu1 %v7285_v61  ;;  %5715 = vmatmul.mubr.msk.f32.gmra.mrb[2].mxu0 %vm252_vm0, %v7073_v18  ;;  %v7986_v18 = vand.u32 4294901760, %v7545_v23  ;;  %v3417_v3 = vsub.f32 %v7547_v41, %v7987_v56 }
 0x130   :  { %6205 = vmatprep.subr.bf16.mxu0 %v7541_v54  ;;  %5370 = vmatmul.mubr.f32.gmra.mrb[2].mxu1 %v7362_v60  ;;  %8063 = vst [vmem:[#allocation31_spill] sm:$0xff] %v7599_v33 }
 0x131   :  { %6025 = vmatprep.subr.bf16.mxu1 %v7312_v43  ;;  %5717 = vmatprep.mubr.msk.f32.mxu0 %vm252_vm0, %v7096_v14  ;;  %v7990_v14 = vand.u32 4294901760, %v7554_v37  ;;  %v3489_v34 = vsub.f32 %v7545_v23, %v7986_v18  ;;  %v6212_v18 = vpack.c.bf16 %v3476_v7, %v3469_v30  ;;  %v3418_v30 = vand.u32 4294901760, %v3417_v3 }
 0x132   :  { %6207 = vmatpush3.bf16.msra.mxu0 %v7541_v54  ;;  %5372 = vmatprep.mubr.f32.mxu1 %v7373_v28  ;;  %v8065_v7 = vand.u32 4294901760, %v7272_v52 }
 0x133   :  { %6027 = vmatpush3.bf16.msra.mxu1 %v7312_v43  ;;  %5718 = vmatmul.mubr.msk.f32.gmra.mrb[4].mxu0 %vm252_vm0, %v7117_v48  ;;  %v7991_v48 = vand.u32 4294901760, %v7585_v50  ;;  %v3427_v53 = vsub.f32 %v7554_v37, %v7990_v14  ;;  %v3490_v58 = vand.u32 4294901760, %v3489_v34  ;;  %v8066_v14 = vand.u32 4294901760, %v7274_v10 }
 0x134   :  { %6209 = vmatprep.subr.bf16.mxu0 %v7563_v62  ;;  %5373 = vmatmul.mubr.f32.gmra.mrb[4].mxu1 %v7393_v0  ;;  %v8068_v10 = vand.u32 4294901760, %v7316_v2 }
 0x135   :  { %6029 = vmatprep.subr.bf16.mxu1 %v7330_v47  ;;  %5734 = vmatprep.mubr.f32.mxu0 %v3408_v24  ;;  %v7632_v24 = vsub.f32 %v3313_v51, %v7599_v33  ;;  %v6032_v56 = vpack.c.bf16 %v8066_v14, %v8065_v7  ;;  %v3437_v51 = vsub.f32 %v7588_v40, %v7993_v15  ;;  %v3428_v34 = vand.u32 4294901760, %v3427_v53 }
 0x136   :  { %6211 = vmatpush3.bf16.msra.mxu0 %v7563_v62  ;;  %5389 = vmatprep.mubr.f32.mxu1 %v8064_v38  ;;  %v3503_v38 = vsub.f32 %v7585_v50, %v7991_v48  ;;  %v8067_v48 = vand.u32 4294901760, %v7595_v29  ;;  %v6216_v14 = vpack.c.bf16 %v3490_v58, %v3483_v12  ;;  %v3497_v7 = vand.u32 4294901760, %v3496_v55 }
 0x137   :  { %6031 = vmatpush3.bf16.msra.mxu1 %v7330_v47  ;;  %5732 = vmatprep.subr.mxu0 %v7599_v33  ;;  %v7655_v52 = vand.u32 4294901760, %v7632_v24  ;;  %v3438_v15 = vand.u32 4294901760, %v3437_v51  ;;  %v8070_v53 = vand.u32 4294901760, %v7314_v46  ;;  %v8074_v55 = vand.u32 4294901760, %v7357_v59 }
 0x138   :  { %5387 = vmatprep.subr.mxu1 %v7371_v13  ;;  %v3447_v3 = vsub.f32 %v7595_v29, %v8067_v48  ;;  %v3504_v25 = vand.u32 4294901760, %v3503_v38  ;;  %v8071_v48 = vand.u32 4294901760, %v7618_v42  ;;  %v6228_v59 = vpack.c.bf16 %v7545_v23, %v7543_v21  ;;  %v8088_v38 = vld [vmem:[#allocation12_spill] sm:$0xff] }
 0x139   :  { %v3510_v58 = vsub.f32 %v7632_v24, %v7655_v52  ;;  %v8089_v51 = vand.u32 4294901760, %v8088_v38 }
 0x13a   :  { %5733 = vmatpush3.msra.mxu0 %v7599_v33  ;;  %v3457_v32 = vsub.f32 %v7618_v42, %v8071_v48  ;;  %v8072_v33 = vand.u32 4294901760, %v7338_v49  ;;  %v3448_v2 = vand.u32 4294901760, %v3447_v3  ;;  %v6220_v46 = vpack.c.bf16 %v3504_v25, %v3497_v7 }
 0x13b   :  { %5388 = vmatpush3.msra.mxu1 %v7371_v13  ;;  %5735 = vmatmul.mubr.f32.vlgmr.msra.gmra.mrb[0].mxu0 %v3418_v30  ;;  %v8069_v30 = vand.u32 4294901760, %v7305_v4  ;;  %v8073_v4 = vand.u32 4294901760, %v7362_v60  ;;  %v8077_v60 = vand.u32 4294901760, %v7393_v0  ;;  %v8085_v25 = vand.u32 4294901760, %v7502_v31 }
 0x13c   :  { %6213 = vmatprep.subr.bf16.mxu0 %v6212_v18  ;;  %5390 = vmatmul.mubr.f32.vlgmr.msra.gmra.mrb[0].mxu1 %v8068_v10  ;;  %v3458_v12 = vand.u32 4294901760, %v3457_v32  ;;  %v6224_v32 = vpack.c.bf16 %v7515_v45, %v7513_v22  ;;  %v8093_v3 = vand.u32 4294901760, %v7515_v45  ;;  %v8100_v45 = vld [vmem:[#allocation23_spill] sm:$0xff] }
 0x13d   :  { %6033 = vmatprep.subr.bf16.mxu1 %v6032_v56  ;;  %5737 = vmatprep.mubr.f32.mxu0 %v3428_v34  ;;  %v6036_v39 = vpack.c.bf16 %v8070_v53, %v8069_v30  ;;  %v8091_v34 = vld [vmem:[#allocation16_spill] sm:$0xff]  ;;  %v8094_v53 = vld [vmem:[#allocation14_spill] sm:$0xff] }
 0x13e   :  { %6215 = vmatpush3.bf16.msra.mxu0 %v6212_v18  ;;  %5392 = vmatprep.mubr.f32.mxu1 %v8072_v33  ;;  %v8075_v18 = vand.u32 4294901760, %v7359_v8  ;;  %v3511_v33 = vand.u32 4294901760, %v3510_v58  ;;  %v6232_v8 = vpack.c.bf16 %v7585_v50, %v7583_v26  ;;  %v8095_v48 = vand.u32 4294901760, %v8094_v53  ;;  %v8096_v58 = vld [vmem:[#allocation15_spill] sm:$0xff] }
 0x13f   :  { %6035 = vmatpush3.bf16.msra.mxu1 %v6032_v56  ;;  %5738 = vmatmul.mubr.f32.gmra.mrb[2].mxu0 %v3438_v15  ;;  %v8076_v56 = vand.u32 4294901760, %v7373_v28  ;;  %v8082_v28 = vld [vmem:[#allocation10_spill] sm:$0xff]  ;;  %v8086_v15 = vld [vmem:[#allocation11_spill] sm:$0xff] }
 0x140   :  { %6217 = vmatprep.subr.bf16.mxu0 %v6216_v14  ;;  %5393 = vmatmul.mubr.f32.gmra.mrb[2].mxu1 %v8073_v4  ;;  %v6040_v49 = vpack.c.bf16 %v8075_v18, %v8074_v55  ;;  %v8097_v4 = vand.u32 4294901760, %v8096_v58  ;;  %v1888_v18 = vand.u32 4294901760, %v8100_v45 }
 0x141   :  { %6037 = vmatprep.subr.bf16.mxu1 %v6036_v39  ;;  %5740 = vmatprep.mubr.f32.mxu0 %v3448_v2  ;;  %v1956_v2 = vsub.f32 %v8094_v53, %v8095_v48 }
 0x142   :  { %6219 = vmatpush3.bf16.msra.mxu0 %v6216_v14  ;;  %5395 = vmatprep.mubr.f32.mxu1 %v8076_v56  ;;  %v8102_v56 = vand.u32 4294901760, %v7545_v23 }
 0x143   :  { %6039 = vmatpush3.bf16.msra.mxu1 %v6036_v39  ;;  %5741 = vmatmul.mubr.f32.gmra.mrb[4].mxu0 %v3458_v12  ;;  %v1949_v39 = vsub.f32 %v8088_v38, %v8089_v51  ;;  %v8098_v12 = vld [vmem:[#allocation26_spill] sm:$0xff] }
 0x144   :  { %6221 = vmatprep.subr.bf16.mxu0 %v6220_v46  ;;  %5396 = vmatmul.mubr.f32.gmra.mrb[4].mxu1 %v8077_v60  ;;  %v1878_v55 = vand.u32 4294901760, %v8098_v12  ;;  %v8103_v60 = vand.u32 4294901760, %v7554_v37 }
 0x145   :  { %6041 = vmatprep.subr.bf16.mxu1 %v6040_v49  ;;  %5757 = vmatprep.mubr.msk.f32.mxu0 %vm252_vm0, %v7476_v9  ;;  %v1950_v30 = vand.u32 4294901760, %v1949_v39 }
 0x146   :  { %6223 = vmatpush3.bf16.msra.mxu0 %v6220_v46  ;;  %5412 = vmatprep.mubr.msk.f32.mxu1 %vm252_vm0, %v7253_v17  ;;  %v1963_v46 = vsub.f32 %v8096_v58, %v8097_v4 }
 0x147   :  { %6043 = vmatpush3.bf16.msra.mxu1 %v6040_v49  ;;  %5755 = vmatprep.subr.mxu0 %v3511_v33  ;;  %v8101_v49 = vand.u32 4294901760, %v7543_v21  ;;  %v8106_v21 = vld [vmem:[#allocation28_spill] sm:$0xff] }
 0x148   :  { %5410 = vmatprep.subr.mxu1 %v7433_v35  ;;  %v1908_v23 = vand.u32 4294901760, %v8106_v21 }
 0x14a   :  { %5756 = vmatpush3.msra.mxu0 %v3511_v33  ;;  %v6252_v33 = vpack.c.bf16 %v8102_v56, %v8101_v49 }
 0x14b   :  { %5411 = vmatpush3.msra.mxu1 %v7433_v35  ;;  %5758 = vmatmul.mubr.msk.f32.vlgmr.msra.gmra.mrb[0].mxu0 %vm252_vm0, %v7500_v44  ;;  %v8084_v35 = vld [vmem:[#allocation13_spill] sm:$0xff] }
 0x14c   :  { %6225 = vmatprep.subr.bf16.mxu0 %v6224_v32  ;;  %5413 = vmatmul.mubr.msk.f32.vlgmr.msra.gmra.mrb[0].mxu1 %vm252_vm0, %v7279_v1 }
 0x14d   :  { %6045 = vmatprep.subr.bf16.mxu1 %v7285_v61  ;;  %5760 = vmatprep.mubr.msk.f32.mxu0 %vm252_vm0, %v7510_v16 }
 0x14e   :  { %6227 = vmatpush3.bf16.msra.mxu0 %v6224_v32  ;;  %5415 = vmatprep.mubr.msk.f32.mxu1 %vm252_vm0, %v7288_v20 }
 0x14f   :  { %6047 = vmatpush3.bf16.msra.mxu1 %v7285_v61  ;;  %5761 = vmatmul.mubr.msk.f32.gmra.mrb[2].mxu0 %vm252_vm0, %v7524_v63 }
 0x150   :  { %6229 = vmatprep.subr.bf16.mxu0 %v6228_v59  ;;  %5416 = vmatmul.mubr.msk.f32.gmra.mrb[2].mxu1 %vm252_vm0, %v7299_v36 }
 0x151   :  { %6049 = vmatprep.subr.bf16.mxu1 %v7312_v43  ;;  %5763 = vmatprep.mubr.msk.f32.mxu0 %vm252_vm0, %v7537_v27 }
 0x152   :  { %6231 = vmatpush3.bf16.msra.mxu0 %v6228_v59  ;;  %5418 = vmatprep.mubr.msk.f32.mxu1 %vm252_vm0, %v7321_v5  ;;  %v1957_v59 = vand.u32 4294901760, %v1956_v2 }
 0x153   :  { %6051 = vmatpush3.bf16.msra.mxu1 %v7312_v43  ;;  %5764 = vmatmul.mubr.msk.f32.gmra.mrb[4].mxu0 %vm252_vm0, %v7559_v11  ;;  %v8080_v43 = vld [vmem:[#allocation9_spill] sm:$0xff] }
 0x154   :  { %6233 = vmatprep.subr.bf16.mxu0 %v6232_v8  ;;  %5419 = vmatmul.mubr.msk.f32.gmra.mrb[4].mxu1 %vm252_vm0, %v7343_v57 }
 0x155   :  { %6053 = vmatprep.subr.bf16.mxu1 %v7330_v47  ;;  %5780 = vmatprep.mubr.f32.mxu0 %v7502_v31  ;;  %v8092_v31 = vand.u32 4294901760, %v7513_v22  ;;  %v8099_v22 = vand.u32 4294901760, %v7547_v41 }
 0x156   :  { %6235 = vmatpush3.bf16.msra.mxu0 %v6232_v8  ;;  %5435 = vmatprep.mubr.msk.f32.mxu1 %vm252_vm0, %v7253_v17  ;;  %v8078_v17 = vld [vmem:[#allocation8_spill] sm:$0xff]  ;;  %v1964_v8 = vand.u32 4294901760, %v1963_v46 }
 0x157   :  { %6055 = vmatpush3.bf16.msra.mxu1 %v7330_v47  ;;  %5778 = vmatprep.subr.mxu0 %v7632_v24  ;;  %v8081_v47 = vand.u32 4294901760, %v8080_v43  ;;  %v6248_v10 = vpack.c.bf16 %v8093_v3, %v8092_v31  ;;  %v6537_v31 = vmov 0.0|0.0   ;;  %v8120_v3 = vmov 0.0  }
 0x158   :  { %5433 = vmatprep.subr.mxu1 %v7371_v13 }
 0x15a   :  { %5779 = vmatpush3.msra.mxu0 %v7632_v24 }
 0x15b   :  { %5434 = vmatpush3.msra.mxu1 %v7371_v13  ;;  %5781 = vmatmul.mubr.f32.vlgmr.msra.gmra.mrb[0].mxu0 %v7547_v41  ;;  %v1935_v13 = vsub.f32 %v8080_v43, %v8081_v47  ;;  %v8104_v41 = vld [vmem:[#allocation27_spill] sm:$0xff]  ;;  %v8109_v47 = vld [vmem:[#allocation30_spill] sm:$0xff] }
 0x15c   :  { %6237 = vmatprep.subr.bf16.mxu0 %v7518_v6  ;;  %5436 = vmatmul.mubr.msk.f32.vlgmr.msra.gmra.mrb[0].mxu1 %vm252_vm0, %v7279_v1  ;;  %v8079_v1 = vand.u32 4294901760, %v8078_v17 }
 0x15d   :  { %6057 = vmatprep.subr.bf16.mxu1 %v6701_v19  ;;  %5783 = vmatprep.mubr.f32.mxu0 %v7554_v37  ;;  %v1936_v0 = vand.u32 4294901760, %v1935_v13  ;;  %v8108_v37 = vand.u32 4294901760, %v7585_v50  ;;  %v8110_v13 = vld [vmem:[#allocation17_spill] sm:$0xff]  ;;  %v8114_v50 = vld [vmem:[#allocation19_spill] sm:$0xff] }
 0x15e   :  { %6239 = vmatpush3.bf16.msra.mxu0 %v7518_v6  ;;  %5438 = vmatprep.mubr.msk.f32.mxu1 %vm252_vm0, %v7288_v20  ;;  %v1928_v61 = vsub.f32 %v8078_v17, %v8079_v1  ;;  %v1898_v17 = vand.u32 4294901760, %v8104_v41  ;;  %v8105_v1 = vand.u32 4294901760, %v7588_v40 }
 0x15f   :  { %6059 = vmatpush3.bf16.msra.mxu1 %v6701_v19  ;;  %5784 = vmatmul.mubr.f32.gmra.mrb[2].mxu0 %v7588_v40  ;;  %v8083_v19 = vld [vmem:[#allocation22_spill] sm:$0xff]  ;;  %v8112_v40 = vld [vmem:[#allocation29_spill] sm:$0xff] }
 0x160   :  { %6241 = vmatprep.subr.bf16.mxu0 %v7541_v54  ;;  %5439 = vmatmul.mubr.msk.f32.gmra.mrb[2].mxu1 %vm252_vm0, %v7299_v36  ;;  %v1868_v20 = vand.u32 4294901760, %v8083_v19  ;;  %v1929_v36 = vand.u32 4294901760, %v1928_v61  ;;  %v8107_v61 = vand.u32 4294901760, %v7583_v26  ;;  %v8111_v19 = vand.u32 4294901760, %v7595_v29 }
 0x161   :  { %6061 = vmatprep.subr.bf16.mxu1 %v8082_v28  ;;  %5786 = vmatprep.mubr.f32.mxu0 %v7595_v29  ;;  %v8115_v29 = vld [vmem:[#allocation21_spill] sm:$0xff] }
 0x162   :  { %6243 = vmatpush3.bf16.msra.mxu0 %v7541_v54  ;;  %5441 = vmatprep.mubr.msk.f32.mxu1 %vm252_vm0, %v7321_v5  ;;  %v8087_v5 = vand.u32 4294901760, %v8086_v15  ;;  %v6068_v14 = vpack.c.bf16 %v1936_v0, %v1929_v36  ;;  %v6256_v43 = vpack.c.bf16 %v8108_v37, %v8107_v61  ;;  %v1918_v36 = vand.u32 4294901760, %v8112_v40 }
 0x163   :  { %6063 = vmatpush3.bf16.msra.mxu1 %v8082_v28  ;;  %5787 = vmatmul.mubr.f32.gmra.mrb[4].mxu0 %v7618_v42  ;;  %v1970_v28 = vsub.f32 %v8110_v13, %v8109_v47  ;;  %v8113_v0 = vand.u32 4294901760, %v7618_v42  ;;  %v8116_v42 = vld [vmem:[#allocation18_spill] sm:$0xff] }
 0x164   :  { %6245 = vmatprep.subr.bf16.mxu0 %v7563_v62  ;;  %5442 = vmatmul.mubr.msk.f32.gmra.mrb[4].mxu1 %vm252_vm0, %v7343_v57  ;;  %v1942_v24 = vsub.f32 %v8086_v15, %v8087_v5  ;;  %v8090_v57 = vld [vmem:[#allocation31_spill] sm:$0xff] }
 0x165   :  { %6065 = vmatprep.subr.bf16.mxu1 %v8084_v35  ;;  %5803 = vmatprep.mubr.f32.mxu0 %v8085_v25  ;;  %v1971_v26 = vand.u32 4294901760, %v1970_v28  ;;  %v4080_v28 = vld [vmem:[#allocation2 + $0x130] sm:$0xff] }
 0x166   :  { %6247 = vmatpush3.bf16.msra.mxu0 %v7563_v62  ;;  %5458 = vmatprep.mubr.f32.mxu1 %v1868_v20  ;;  %v1943_v7 = vand.u32 4294901760, %v1942_v24  ;;  %v6076_v20 = vpack.c.bf16 %v1964_v8, %v1957_v59  ;;  %v4135_v24 = vld [vmem:[#allocation2 + $0x160] sm:$0xff] }
 0x167   :  { %6067 = vmatpush3.bf16.msra.mxu1 %v8084_v35  ;;  %5801 = vmatprep.subr.mxu0 %v8090_v57  ;;  %v8118_v35 = vld [vmem:[#allocation25_spill] sm:$0xff]  ;;  %v7860_v38 = vand.u32 4294901760, %v4135_v24 }
 0x168   :  { %5456 = vmatprep.subr.mxu1 %v8091_v34  ;;  %v6072_v32 = vpack.c.bf16 %v1950_v30, %v1943_v7  ;;  %v4078_v8 = vld [vmem:[#allocation2 + $0x120] sm:$0xff] }
 0x169   :  { %v7863_v39 = vsub.f32 %v4135_v24, %v7860_v38 }
 0x16a   :  { %5802 = vmatpush3.msra.mxu0 %v8090_v57 }
 0x16b   :  { %5457 = vmatpush3.msra.mxu1 %v8091_v34  ;;  %5804 = vmatmul.mubr.f32.vlgmr.msra.gmra.mrb[0].mxu0 %v8099_v22  ;;  %v4239_v34 = vand.u32 4294901760, %v7863_v39  ;;  %v4752_v22 = vld [vmem:[#allocation2 + $0x118] ss:$0 sm:$0xff] }
 0x16c   :  { %6249 = vmatprep.subr.bf16.mxu0 %v6248_v10  ;;  %5459 = vmatmul.mubr.f32.vlgmr.msra.gmra.mrb[0].mxu1 %v1878_v55 }
 0x16d   :  { %6069 = vmatprep.subr.bf16.mxu1 %v6068_v14  ;;  %5806 = vmatprep.mubr.f32.mxu0 %v8103_v60 }
 0x16e   :  { %6251 = vmatpush3.bf16.msra.mxu0 %v6248_v10  ;;  %5461 = vmatprep.mubr.f32.mxu1 %v1888_v18  ;;  %v4240_v10 = vsub.f32 %v7863_v39, %v4239_v34 }
 0x16f   :  { %6071 = vmatpush3.bf16.msra.mxu1 %v6068_v14  ;;  %5807 = vmatmul.mubr.f32.gmra.mrb[2].mxu0 %v8105_v1 }
 0x170   :  { %6253 = vmatprep.subr.bf16.mxu0 %v6252_v33  ;;  %5462 = vmatmul.mubr.f32.gmra.mrb[2].mxu1 %v1898_v17  ;;  %v4241_v14 = vand.u32 4294901760, %v4240_v10 }
 0x171   :  { %6073 = vmatprep.subr.bf16.mxu1 %v6072_v32  ;;  %5809 = vmatprep.mubr.f32.mxu0 %v8111_v19 }
 0x172   :  { %6255 = vmatpush3.bf16.msra.mxu0 %v6252_v33  ;;  %5464 = vmatprep.mubr.f32.mxu1 %v1908_v23  ;;  %v4079_v33 = vld [vmem:[#allocation2 + $0x128] sm:$0xff] }
 0x173   :  { %6075 = vmatpush3.bf16.msra.mxu1 %v6072_v32  ;;  %5810 = vmatmul.mubr.f32.gmra.mrb[4].mxu0 %v8113_v0 }
 0x174   :  { %6257 = vmatprep.subr.bf16.mxu0 %v6256_v43  ;;  %5465 = vmatmul.mubr.f32.gmra.mrb[4].mxu1 %v1918_v36 }
 0x175   :  { %6077 = vmatprep.subr.bf16.mxu1 %v6076_v20  ;;  %5826 = vmatprep.mubr.msk.f32.mxu0 %vm252_vm0, %v7476_v9 }
 0x176   :  { %6259 = vmatpush3.bf16.msra.mxu0 %v6256_v43  ;;  %5481 = vmatprep.mubr.msk.f32.mxu1 %vm252_vm0, %v8114_v50 }
 0x177   :  { %6079 = vmatpush3.bf16.msra.mxu1 %v6076_v20  ;;  %5824 = vmatprep.subr.mxu0 %v7655_v52 }
 0x178   :  { %5479 = vmatprep.subr.mxu1 %v1971_v26 }
 0x17a   :  { %5825 = vmatpush3.msra.mxu0 %v7655_v52  ;;  %v8117_v52 = vld [vmem:[#allocation20_spill] sm:$0xff] }
 0x17b   :  { %5480 = vmatpush3.msra.mxu1 %v1971_v26  ;;  %5827 = vmatmul.mubr.msk.f32.vlgmr.msra.gmra.mrb[0].mxu0 %vm252_vm0, %v7500_v44 }
 0x17c   :  { %6261 = vmatprep.subr.bf16.mxu0 %v7518_v6  ;;  %5482 = vmatmul.mubr.msk.f32.vlgmr.msra.gmra.mrb[0].mxu1 %vm252_vm0, %v8115_v29  ;;  %v4081_v29 = vld [vmem:[#allocation2 + $0x138] sm:$0xff] }
 0x17d   :  { %5829 = vmatprep.mubr.msk.f32.mxu0 %vm252_vm0, %v7510_v16  ;;  %6263 = vmatpush3.bf16.msra.mxu0 %v7518_v6  ;;  %v8119_v6 = vld [vmem:[#allocation24_spill] sm:$0xff] }
 0x17e   :  { %5484 = vmatprep.mubr.msk.f32.mxu1 %vm252_vm0, %v8116_v42  ;;  %6265 = vmatprep.subr.bf16.mxu0 %v7541_v54 }
 0x17f   :  { %5830 = vmatmul.mubr.msk.f32.gmra.mrb[2].mxu0 %vm252_vm0, %v7524_v63  ;;  %6275 = vmatprep.subr.bf16.mxu1 %v6537_v31 }
 0x180   :  { %5485 = vmatmul.mubr.msk.f32.gmra.mrb[2].mxu1 %vm252_vm0, %v8117_v52  ;;  %5832 = vmatprep.mubr.msk.f32.mxu0 %vm252_vm0, %v7537_v27 }
 0x181   :  { %6267 = vmatpush3.bf16.msra.mxu0 %v7541_v54  ;;  %5487 = vmatprep.mubr.msk.f32.mxu1 %vm252_vm0, %v8118_v35  ;;  %v4134_v54 = vld [vmem:[#allocation2 + $0x158] sm:$0xff] }
 0x182   :  { %6269 = vmatprep.subr.bf16.mxu0 %v7563_v62  ;;  %v4148_v25 = vand.u32 4294901760, %v4134_v54 }
 0x183   :  { %5833 = vmatmul.mubr.msk.f32.gmra.mrb[4].mxu0 %vm252_vm0, %v7559_v11 }
 0x184   :  { %5488 = vmatmul.mubr.msk.f32.gmra.mrb[4].mxu1 %vm252_vm0, %v8119_v6  ;;  %5849 = vmatprep.mubr.msk.f32.mxu0 %vm252_vm0, %v7476_v9  ;;  %v4133_v9 = vld [vmem:[#allocation2 + $0x150] sm:$0xff]  ;;  %v7854_v5 = vsub.f32 %v4134_v54, %v4148_v25  ;;  %v4083_v6 = vld [vmem:[#allocation2 + $0x148] sm:$0xff]  ;;  %v4082_v54 = vld [vmem:[#allocation2 + $0x140] sm:$0xff] }
 0x185   :  { %6271 = vmatpush3.bf16.msra.mxu0 %v7563_v62  ;;  %v4145_v62 = vand.u32 4294901760, %v4133_v9 }
 0x186   :  { %5847 = vmatprep.subr.mxu0 %v8090_v57 }
 0x187   :  { %v7852_v15 = vsub.f32 %v4133_v9, %v4145_v62  ;;  %v7879_v30 = vpack.c.bf16 %v4148_v25, %v4145_v62 }
 0x189   :  { %5848 = vmatpush3.msra.mxu0 %v8090_v57  ;;  %v6279_v7 = vpack.c.bf16 %v7854_v5, %v7852_v15 }
 0x18a   :  { %5850 = vmatmul.mubr.msk.f32.vlgmr.msra.gmra.mrb[0].mxu0 %vm252_vm0, %v7500_v44  ;;  %v4225_v44 = vand.u32 4294901760, %v7852_v15  ;;  %6272 = vmatprep.subr.bf16.mxu0 %v6537_v31 }
 0x18b   :  { %5852 = vmatprep.mubr.msk.f32.mxu0 %vm252_vm0, %v7510_v16  ;;  %v4232_v16 = vand.u32 4294901760, %v7854_v5  ;;  %6274 = vmatpush3.bf16.msra.mxu0 %v7879_v30 }
 0x18c   :  { %5862 = vmatprep.subr.mxu0 %v8120_v3 }
 0x18d   :  { %v7884_v53 = vpack.c.bf16 %v4232_v16, %v4225_v44 }
 0x18e   :  { %5853 = vmatmul.mubr.msk.f32.gmra.mrb[2].mxu0 %vm252_vm0, %v7524_v63  ;;  %v4226_v63 = vsub.f32 %v7852_v15, %v4225_v44 }
 0x18f   :  { %5855 = vmatprep.mubr.msk.f32.mxu0 %vm252_vm0, %v7537_v27  ;;  %v4233_v27 = vsub.f32 %v7854_v5, %v4232_v16  ;;  %5863 = vmatpush3.msra.mxu0 %v7860_v38 }
 0x191   :  { %v4234_v51 = vand.u32 4294901760, %v4233_v27 }
 0x192   :  { %5856 = vmatmul.mubr.msk.f32.gmra.mrb[4].mxu0 %vm252_vm0, %v7559_v11  ;;  %v4227_v11 = vand.u32 4294901760, %v4226_v63  ;;  %vm6538_vm0 = vmmov 0  }
 0x193   :  { %5873 = vmatprep.mubr.msk.f32.mxu1 %vm6538_vm0, %v8120_v3  ;;  %5864 = vmatprep.mubr.msk.f32.mxu0 %vm6538_vm0, %v8120_v3 }
 0x194   :  { %v6276_v57 = vpack.c.bf16 %v4234_v51, %v4227_v11 }
 0x196   :  { %6277 = vmatpush3.bf16.msra.mxu1 %v6276_v57 }
 0x197   :  { %5871 = vmatprep.subr.mxu1 %v8120_v3 }
 0x19a   :  { %5872 = vmatpush3.msra.mxu1 %v4241_v14 }
 0x19b   :  { %6278 = vmatprep.subr.bf16.mxu1 %v6537_v31 }
 0x24f   :  { %v5483_v48 = vpop.f32.mrb[0].mxu1 }
 0x250   :  { %v2026_v2 = vpop.f32.mrb[1].mxu1 }
 0x253   :  { %v5486_v58 = vpop.f32.mrb[2].mxu1 }
 0x254   :  { %v2038_v4 = vpop.f32.mrb[3].mxu1 }
 0x257   :  { %v5489_v46 = vpop.f32.mrb[4].mxu1 }
 0x258   :  { %v2050_v12 = vpop.f32.mrb[5].mxu1 }
 0x25d   :  { %v5851_v55 = vpop.f32.mrb[0].mxu0 }
 0x25e   :  { %v6290_v45 = vadd.f32 %v5851_v55, %v5483_v48  ;;  %v4037_v18 = vpop.f32.mrb[1].mxu0 }
 0x25f   :  { %v6291_v49 = vadd.f32 %v4037_v18, %v2026_v2 }
 0x260   :  { %v4089_v56 = vadd.f32 %v6290_v45, %v4752_v22 }
 0x261   :  { %v4088_v60 = vadd.f32 %v6291_v49, %v4752_v22  ;;  %v5854_v32 = vpop.f32.mrb[2].mxu0 }
 0x262   :  { %v4095_v59 = vmax.f32 %v4089_v56, 0.0  ;;  %v6292_v41 = vadd.f32 %v5854_v32, %v5486_v58  ;;  %v4049_v17 = vpop.f32.mrb[3].mxu0 }
 0x263   :  { %v4094_v1 = vmax.f32 %v4088_v60, 0.0  ;;  %v6293_v21 = vadd.f32 %v4049_v17, %v2038_v4 }
 0x264   :  { %v4101_v23 = vmul.f32 %v4095_v59, %v4079_v33  ;;  %v4091_v61 = vadd.f32 %v6292_v41, %v4752_v22 }
 0x265   :  { %v4100_v37 = vmul.f32 %v4094_v1, %v4078_v8  ;;  %v4090_v43 = vadd.f32 %v6293_v21, %v4752_v22  ;;  %v5857_v47 = vpop.f32.mrb[4].mxu0 }
 0x266   :  { %v4108_v13 = vsel %vm4106_vm1, %v4101_v23, -inf  ;;  %v6294_v19 = vadd.f32 %v5857_v47, %v5489_v46  ;;  %v4061_v20 = vpop.f32.mrb[5].mxu0  ;;  %v4097_v36 = vmax.f32 %v4091_v61, 0.0 }
 0x267   :  { %v4107_v40 = vsel %vm4106_vm1, %v4100_v37, -inf  ;;  %v4096_v0 = vmax.f32 %v4090_v43, 0.0  ;;  %v6295_v26 = vadd.f32 %v4061_v20, %v2050_v12 }
 0x268   :  { %v4110_v50 = vmax.f32 %v4107_v40, %v4108_v13  ;;  %v4093_v42 = vadd.f32 %v6294_v19, %v4752_v22  ;;  %v4103_v62 = vmul.f32 %v4097_v36, %v4081_v29 }
 0x269   :  { %v4102_v52 = vmul.f32 %v4096_v0, %v4080_v28  ;;  %v4092_v35 = vadd.f32 %v6295_v26, %v4752_v22 }
 0x26a   :  { %v4099_v9 = vmax.f32 %v4093_v42, 0.0  ;;  %v4118_v11 = vsel %vm4106_vm1, %v4103_v62, -inf }
 0x26b   :  { %v4109_v25 = vsel %vm4106_vm1, %v4102_v52, -inf  ;;  %v4098_v44 = vmax.f32 %v4092_v35, 0.0 }
 0x26c   :  { %v4111_v16 = vmax.f32 %v4110_v50, %v4109_v25  ;;  %v4105_v24 = vmul.f32 %v4099_v9, %v4083_v6 }
 0x26d   :  { %v4104_v63 = vmul.f32 %v4098_v44, %v4082_v54 }
 0x26e   :  { %v4112_v27 = vrot.slane %v4111_v16, 4  ;;  %v4120_v14 = vsel %vm4106_vm1, %v4105_v24, -inf }
 0x26f   :  { %v4119_v51 = vsel %vm4106_vm1, %v4104_v63, -inf }
 0x270   :  { %v4113_v57 = vmax.f32 %v4111_v16, %v4112_v27  ;;  %v4121_v10 = vmax.f32 %v4118_v11, %v4119_v51 }
 0x272   :  { %v4114_v48 = vrot.slane %v4113_v57, 2  ;;  %v4122_v2 = vmax.f32 %v4121_v10, %v4120_v14 }
 0x274   :  { %v4123_v58 = vrot.slane %v4122_v2, 4  ;;  %v4115_v4 = vmax.f32 %v4113_v57, %v4114_v48 }
 0x276   :  { %v4124_v46 = vmax.f32 %v4122_v2, %v4123_v58  ;;  %v4116_v55 = vrot.slane %v4115_v4, 1 }
 0x278   :  { %v4125_v12 = vrot.slane %v4124_v46, 2  ;;  %v4117_v18 = vmax.f32 %v4115_v4, %v4116_v55 }
 0x27a   :  { %v4126_v22 = vmax.f32 %v4124_v46, %v4125_v12 }
 0x27c   :  { %v4127_v45 = vrot.slane %v4126_v22, 1 }
 0x27e   :  { %v4128_v49 = vmax.f32 %v4126_v22, %v4127_v45 }
 0x280   :  { %v4130_v56 = vsel %vm4129_vm2, %v4117_v18, %v4128_v49 }
 0x281   :  { %v4132_v33 = vsel %vm4131_vm3, %v4130_v56, 0.0 }
 0x282   :  { %v4142_v60 = vsel %vm4106_vm1, %v4132_v33, 0 }
 0x283   :  { %v4212_v32 = vand.u32 4294901760, %v4142_v60 }
 0x285   :  { %v4213_v59 = vsub.f32 %v4142_v60, %v4212_v32  ;;  %5874 = vmatmul.mubr.f32.vlgmr.msra.gmra.mrb[6].mxu1 %v4212_v32 }
 0x286   :  { %6280 = vmatpush3.bf16.msra.mxu1 %v6279_v7  ;;  %5882 = vmatprep.mubr.msk.f32.mxu1 %vm6538_vm0, %v8120_v3  ;;  %v4753_v7 = vld [vmem:[#allocation2 + $0x168] ss:$0 sm:$0xff] }
 0x287   :  { %5880 = vmatprep.subr.mxu1 %v8120_v3  ;;  %v4214_v8 = vand.u32 4294901760, %v4213_v59 }
 0x289   :  { %v4215_v41 = vsub.f32 %v4213_v59, %v4214_v8 }
 0x28a   :  { %5881 = vmatpush3.msra.mxu1 %v7863_v39 }
 0x28b   :  { %v4216_v17 = vand.u32 4294901760, %v4215_v41  ;;  %6281 = vmatprep.subr.bf16.mxu1 %v6537_v31 }
 0x28d   :  { %5865 = vmatmul.mubr.f32.vlgmr.msra.gmra.mrb[6].mxu0 %v4216_v17  ;;  %5883 = vmatmul.mubr.f32.vlgmr.msra.gmra.mrb[6].mxu1 %v4213_v59 }
 0x28e   :  { %6283 = vmatpush3.bf16.msra.mxu1 %v7879_v30  ;;  %5891 = vmatprep.mubr.msk.f32.mxu1 %vm6538_vm0, %v8120_v3 }
 0x28f   :  { %5889 = vmatprep.subr.mxu1 %v8120_v3 }
 0x292   :  { %5890 = vmatpush3.msra.mxu1 %v7860_v38 }
 0x293   :  { %6284 = vmatprep.subr.bf16.mxu1 %v6537_v31 }
 0x295   :  { %5892 = vmatmul.mubr.f32.vlgmr.msra.gmra.mrb[6].mxu1 %v4214_v8 }
 0x296   :  { %6286 = vmatpush3.bf16.msra.mxu1 %v7884_v53  ;;  %5900 = vmatprep.mubr.msk.f32.mxu1 %vm6538_vm0, %v8120_v3 }
 0x297   :  { %5898 = vmatprep.subr.mxu1 %v8120_v3 }
 0x29a   :  { %5899 = vmatpush3.msra.mxu1 %v4239_v34 }
 0x29b   :  { %6287 = vmatprep.subr.bf16.mxu1 %v6537_v31 }
 0x29d   :  { %5901 = vmatmul.mubr.f32.vlgmr.msra.gmra.mrb[6].mxu1 %v4212_v32 }
 0x29e   :  { %6289 = vmatpush3.bf16.msra.mxu1 %v7879_v30  ;;  %5909 = vmatprep.mubr.msk.f32.mxu1 %vm6538_vm0, %v8120_v3 }
 0x29f   :  { %5907 = vmatprep.subr.mxu1 %v8120_v3 }
 0x2a2   :  { %5908 = vmatpush3.msra.mxu1 %v7860_v38 }
 0x2a5   :  { %5910 = vmatmul.mubr.f32.vlgmr.msra.gmra.mrb[6].mxu1 %v4212_v32 }
 0x360   :  { %v4218_v15 = vpop.f32.mrb[6].mxu0 }
 0x361   :  { %v5866_v5 = vpop.f32.mrb[7].mxu0  ;;  %v4219_v39 = vadd.f32 %v4753_v7, %v4218_v15 }
 0x378   :  { %v4612_v34 = vpop.f32.mrb[6].mxu1 }
 0x379   :  { %v6297_v53 = vadd.f32 %v4612_v34, %v4219_v39  ;;  %v5911_v31 = vpop.f32.mrb[7].mxu1 }
 0x37b   :  { %4616 = vst [vmem:[#allocation5] sm:$0xff] %v6297_v53 }
 0x37c   :  { %6517 = shalt.err (!%p6514_p12)
}
 0x37d   :  { %s6518_s1 = scalar_lea.hbm %s7933_s2, 128 }
 0x37e   :  { %p6519_p13 = scmp.ne.s32.totalorder %s7933_s2, %s6518_s1  ;;  %p6522_p0 = scmp.lt.u32.totalorder %s6518_s1, %s7933_s2 }
 0x380   :  { %p6524_p1 = pnand %p6522_p0, %p6519_p13 }
 0x382   :  { %6527 = shalt.err (!%p6524_p1)
}
 0x383   :  { %4626 = dma.vmem_to_hbm [thread:$0]  %s4624_s25, 128, %s7933_s2, [#allocation4]  }
 0x384   :  { %6530 = dma.done.wait [#allocation4], 128  }
 0x385   :  { %6531 = vsyncadd [#allocation4], 4294967168 }
 0x386   :  { %4630 = vsyncpa [#allocation3], 1 }
 0x387   :  { %4631 = vsyncpa [#allocation4], 1 }

</bundles_post_ra>
